<compile_context>
chip_gen: v7x
topology: tpu7x:2x2x1
jax: 0.10.0
libtpu: 0.0.40
codegen_flags: <defaults>
</compile_context>

<pallas_src>
import functools
import math

import jax
import jax.numpy as jnp
from jax import lax
from jax.experimental import pallas as pl
from jax.experimental.pallas import tpu as pltpu

_INV_SQRT2 = 1.0 / math.sqrt(2.0)
_LANE = 128
_SUBLANE = 8


def _round_up(x, m):
    return ((x + m - 1) // m) * m


def _cdiv(a, b):
    return -(-a // b)


def _apply_act(y, act, gelu_approx):
    if act == "sine":
        return jnp.sin(y)
    if act == "gelu":
        if gelu_approx:
            return jax.nn.gelu(y, approximate=True)   # tanh -> EUP slot
        return 0.5 * y * (1.0 + lax.erf(y * _INV_SQRT2))  # torch.nn.GELU default
    return y


# ----------------------------------------------------------------------------
# Fused kernel: full DenseNet forward for one batch tile.
#   x_ref      : (TB, in_dim)        f32   input tile at its TRUE feature width
#   w_refs[l]  : (fin_pad, fout_pad) bf16  per-layer weights, VMEM-resident
#   b_refs[l]  : (1, fout_pad)       f32   per-layer biases,  VMEM-resident
#   o_ref      : (TB, out_pad)       f32   output tile (out_dim padded to 128)
# Zero padding is transparent because every activation satisfies f(0) == 0.
# ----------------------------------------------------------------------------
def _densenet_kernel(x_ref, *refs, acts, residuals, gelu_approx, in_dim):
    L = len(acts)
    w_refs = refs[:L]
    b_refs = refs[L:2 * L]
    o_ref = refs[2 * L]

    h = x_ref[...].astype(jnp.float32)
    for l in range(L):
        w = w_refs[l]
        if l == 0 and in_dim <= 32:
            # Tiny contraction dim: in_dim broadcast-FMAs on the VPU beat an
            # almost-empty MXU call and let x stay un-padded in HBM.
            xh = h.astype(jnp.bfloat16).astype(jnp.float32)   # bf16-input numerics
            y = jnp.zeros((xh.shape[0], w.shape[1]), jnp.float32)
            for d in range(in_dim):
                y = y + xh[:, d:d + 1] * w[d:d + 1, :].astype(jnp.float32)
        else:
            # bf16 MXU matmul with f32 accumulation; weights already in VMEM.
            y = jnp.dot(h.astype(jnp.bfloat16), w[...],
                        preferred_element_type=jnp.float32)
        y = y + b_refs[l][...]                                 # (1, F) bias broadcast
        y = _apply_act(y, acts[l], gelu_approx)
        # residual only inside a DenseBlock (fin == fout, asserted at pack time)
        h = h + y if residuals[l] else y
    o_ref[...] = h.astype(o_ref.dtype)


# ----------------------------------------------------------------------------
# Wrapper: balanced batch tiling, single pallas_call, slice the real output.
# ----------------------------------------------------------------------------
def dense_net_forward(x, packed, *, block_rows=1024, gelu_approx=False):
    """Runs the whole DenseNet as one fused Pallas kernel.

    block_rows: target batch-tile size. 1024-2048 is a good default on
    v5e/v6e (128 MiB VMEM); keep it <= 1024 on v7x (64 MiB VMEM) and prefer a
    grid of >= 2 steps there so both TensorCores get work.
    """
    w_list = packed["w_list"]
    b_list = packed["b_list"]
    acts = packed["acts"]
    residuals = packed["residuals"]
    in_dim = packed["input_dim"]
    out_dim = packed["output_dim"]
    out_pad = packed["out_pad"]
    f_max = packed["f_max"]
    L = len(w_list)

    B, xin = x.shape
    assert xin == in_dim, f"expected input_dim={in_dim}, got {xin}"

    # Balanced batch tiling: minimizes row padding (<8 wasted rows per tile)
    # instead of rounding B up to a full multiple of block_rows.
    n_tiles = max(1, _cdiv(B, block_rows))
    TB = _round_up(_cdiv(B, n_tiles), _SUBLANE)
    B_pad = TB * n_tiles

    # Only batch rows are padded in HBM; the feature axis keeps its true width.
    x = x.astype(jnp.float32)
    if B_pad != B:
        x = jnp.pad(x, ((0, B_pad - B), (0, 0)))

    # Explicit VMEM budget: single-buffered resident weights/biases,
    # double-buffered in/out tiles, plus headroom for live f32 activations.
    w_bytes = sum(int(w.size) * w.dtype.itemsize for w in w_list)
    b_bytes = sum(int(b.size) * b.dtype.itemsize for b in b_list)
    io_bytes = 2 * TB * _round_up(in_dim, _LANE) * 4 + 2 * TB * out_pad * 4
    tmp_bytes = 6 * TB * f_max * 4
    vmem_needed = w_bytes + b_bytes + io_bytes + tmp_bytes
    vmem_limit = int(min(64 * 2 ** 20, max(32 * 2 ** 20, int(vmem_needed * 1.5))))

    nl_widths = [int(w_list[l].shape[1]) for l in range(L) if acts[l] != "none"]
    cost = pl.CostEstimate(
        flops=int(2 * B_pad * sum(int(w.shape[0]) * int(w.shape[1]) for w in w_list)),
        transcendentals=int(B_pad * sum(nl_widths)),
        bytes_accessed=int(B_pad * in_dim * 4 + B_pad * out_pad * 4
                           + w_bytes + b_bytes),
    )

    kernel = functools.partial(_densenet_kernel, acts=acts, residuals=residuals,
                               gelu_approx=gelu_approx, in_dim=in_dim)

    # Weights/biases: whole-array VMEM residents (single copy, not pipelined).
    resident_specs = [pl.BlockSpec(memory_space=pltpu.MemorySpace.VMEM)
                      for _ in range(2 * L)]

    out = pl.pallas_call(
        kernel,
        out_shape=jax.ShapeDtypeStruct((B_pad, out_pad), jnp.float32),
        grid=(n_tiles,),
        in_specs=[pl.BlockSpec((TB, in_dim), lambda i: (i, 0))] + resident_specs,
        out_specs=pl.BlockSpec((TB, out_pad), lambda i: (i, 0)),
        compiler_params=pltpu.CompilerParams(
            dimension_semantics=("parallel",),      # megacore sharding on v7x
            vmem_limit_bytes=vmem_limit),
        cost_estimate=cost,
    )(x, *w_list, *b_list)

    return out[:B, :out_dim]


# ----------------------------------------------------------------------------
# Parameter construction (PyTorch-Linear-style uniform init) + packing.
# ----------------------------------------------------------------------------
def _init_linear(key, fan_in, fan_out):
    kw, kb = jax.random.split(key)
    bound = 1.0 / math.sqrt(fan_in)
    w = jax.random.uniform(kw, (fan_in, fan_out), jnp.float32, -bound, bound)
    b = jax.random.uniform(kb, (fan_out,), jnp.float32, -bound, bound)
    return w, b


def make_dense_net_params(key, input_dim, output_dim, neurons_per_block,
                          layers_per_block=None, weight_dtype=jnp.bfloat16):
    """Builds the DenseNet layer stack and packs it for the fused kernel.

    Returns (packed, layers):
      packed: dict consumed by dense_net_forward (per-layer padded params)
      layers: flat list of (w, b, act, residual) in original (unpadded) dims,
              used by the pure-JAX reference.
    """
    if layers_per_block is None:
        layers_per_block = [3 for _ in neurons_per_block]
    assert len(layers_per_block) == len(neurons_per_block)

    layers = []

    # input Linear(input_dim -> neurons[0]) + Sine
    key, sub = jax.random.split(key)
    w, b = _init_linear(sub, input_dim, neurons_per_block[0])
    layers.append((w, b, "sine", False))

    n_blocks = len(neurons_per_block)
    for i in range(n_blocks):
        feats = neurons_per_block[i]
        # DenseBlock: residual layers; first activation Sine, rest GELU
        for j in range(layers_per_block[i]):
            key, sub = jax.random.split(key)
            w, b = _init_linear(sub, feats, feats)
            layers.append((w, b, "sine" if j == 0 else "gelu", True))
        # transition Linear(neurons[i] -> neurons[i+1]) + GELU (not after last block)
        if i != n_blocks - 1:
            key, sub = jax.random.split(key)
            w, b = _init_linear(sub, feats, neurons_per_block[i + 1])
            layers.append((w, b, "gelu", False))

    # final Linear(neurons[-1] -> output_dim), no activation
    key, sub = jax.random.split(key)
    w, b = _init_linear(sub, neurons_per_block[-1], output_dim)
    layers.append((w, b, "none", False))

    # --- per-layer lane padding: fout -> multiple of 128; fin stays true for
    # layer 0 (x enters un-padded) and otherwise equals the previous layer's
    # padded fout. Zero padding is transparent because f(0) == 0 for sin/GELU.
    w_list, b_list, acts, residuals = [], [], [], []
    for l, (w, b, act, res) in enumerate(layers):
        assert act in ("sine", "gelu", "none"), "activation must satisfy f(0)=0"
        fin, fout = w.shape
        if res:
            assert fin == fout, "residual layer requires fin == fout"
        fin_pad = fin if l == 0 else _round_up(fin, _LANE)
        fout_pad = _round_up(fout, _LANE)
        wp = jnp.zeros((fin_pad, fout_pad), weight_dtype)
        wp = wp.at[:fin, :fout].set(w.astype(weight_dtype))
        bp = jnp.zeros((1, fout_pad), jnp.float32).at[0, :fout].set(b)
        w_list.append(wp)
        b_list.append(bp)
        acts.append(act)
        residuals.append(res)

    packed = dict(w_list=tuple(w_list), b_list=tuple(b_list), acts=tuple(acts),
                  residuals=tuple(residuals), input_dim=int(input_dim),
                  output_dim=int(output_dim),
                  out_pad=int(w_list[-1].shape[1]),
                  f_max=int(max(int(w.shape[1]) for w in w_list)))
    return packed, layers


# ----------------------------------------------------------------------------
# Pure-JAX reference (same bf16-matmul / f32-accumulate numerics, unpadded).
# ----------------------------------------------------------------------------
def dense_net_forward_ref(x, layers, gelu_approx=False):
    h = x.astype(jnp.float32)
    for (w, b, act, res) in layers:
        y = jnp.dot(h.astype(jnp.bfloat16), w.astype(jnp.bfloat16),
                    preferred_element_type=jnp.float32) + b
        y = _apply_act(y, act, gelu_approx)
        h = h + y if res else y
    return h


if __name__ == "__main__":
    key = jax.random.PRNGKey(0)

    # small shapes consistent with the module's (batch, input_dim) contract
    batch, input_dim, output_dim = 8, 4, 2
    neurons_per_block = [32, 32]
    layers_per_block = [3, 3]

    kx, kp, kx2 = jax.random.split(key, 3)
    x = jax.random.normal(kx, (batch, input_dim), dtype=jnp.float32)
    packed, layers = make_dense_net_params(kp, input_dim, output_dim,
                                           neurons_per_block, layers_per_block)

    # single-tile path
    out = jax.block_until_ready(dense_net_forward(x, packed))
    ref = dense_net_forward_ref(x, layers)
    assert out.shape == (batch, output_dim)
    assert jnp.allclose(out, ref, atol=2e-3, rtol=2e-3), \
        float(jnp.max(jnp.abs(out - ref)))

    # multi-tile path: uneven batch, several grid steps, balanced row padding
    x2 = jax.random.normal(kx2, (40, input_dim), dtype=jnp.float32)
    out2 = jax.block_until_ready(dense_net_forward(x2, packed, block_rows=16))
    ref2 = dense_net_forward_ref(x2, layers)
    assert out2.shape == (40, output_dim)
    assert jnp.allclose(out2, ref2, atol=2e-3, rtol=2e-3), \
        float(jnp.max(jnp.abs(out2 - ref2)))

    print("KERNEL_OK")
</pallas_src>

<mosaic_0001>
module attributes {stable_mosaic.version = 11 : i64} {
  func.func @_densenet_kernel(%arg0: i32, %arg1: memref<8x4xf32, #tpu.memory_space<vmem>>, %arg2: memref<4x128xbf16, #tpu.memory_space<vmem>>, %arg3: memref<128x128xbf16, #tpu.memory_space<vmem>>, %arg4: memref<128x128xbf16, #tpu.memory_space<vmem>>, %arg5: memref<128x128xbf16, #tpu.memory_space<vmem>>, %arg6: memref<128x128xbf16, #tpu.memory_space<vmem>>, %arg7: memref<128x128xbf16, #tpu.memory_space<vmem>>, %arg8: memref<128x128xbf16, #tpu.memory_space<vmem>>, %arg9: memref<128x128xbf16, #tpu.memory_space<vmem>>, %arg10: memref<128x128xbf16, #tpu.memory_space<vmem>>, %arg11: memref<1x128xf32, #tpu.memory_space<vmem>>, %arg12: memref<1x128xf32, #tpu.memory_space<vmem>>, %arg13: memref<1x128xf32, #tpu.memory_space<vmem>>, %arg14: memref<1x128xf32, #tpu.memory_space<vmem>>, %arg15: memref<1x128xf32, #tpu.memory_space<vmem>>, %arg16: memref<1x128xf32, #tpu.memory_space<vmem>>, %arg17: memref<1x128xf32, #tpu.memory_space<vmem>>, %arg18: memref<1x128xf32, #tpu.memory_space<vmem>>, %arg19: memref<1x128xf32, #tpu.memory_space<vmem>>, %arg20: memref<8x128xf32, #tpu.memory_space<vmem>>) attributes {dimension_semantics = [#tpu.dimension_semantics<parallel>], iteration_bounds = array<i64: 1>, scalar_prefetch = 0 : i64, scratch_operands = 0 : i64, tpu.core_type = #tpu.core_type<tc>, window_params = [{transform_indices = @transform_0, window_bounds = array<i64: 8, 4>}, {pipeline_mode = #tpu.pipeline_mode<synchronous>, transform_indices = @transform_1, window_bounds = array<i64: 4, 128>}, {pipeline_mode = #tpu.pipeline_mode<synchronous>, transform_indices = @transform_2, window_bounds = array<i64: 128, 128>}, {pipeline_mode = #tpu.pipeline_mode<synchronous>, transform_indices = @transform_3, window_bounds = array<i64: 128, 128>}, {pipeline_mode = #tpu.pipeline_mode<synchronous>, transform_indices = @transform_4, window_bounds = array<i64: 128, 128>}, {pipeline_mode = #tpu.pipeline_mode<synchronous>, transform_indices = @transform_5, window_bounds = array<i64: 128, 128>}, {pipeline_mode = #tpu.pipeline_mode<synchronous>, transform_indices = @transform_6, window_bounds = array<i64: 128, 128>}, {pipeline_mode = #tpu.pipeline_mode<synchronous>, transform_indices = @transform_7, window_bounds = array<i64: 128, 128>}, {pipeline_mode = #tpu.pipeline_mode<synchronous>, transform_indices = @transform_8, window_bounds = array<i64: 128, 128>}, {pipeline_mode = #tpu.pipeline_mode<synchronous>, transform_indices = @transform_9, window_bounds = array<i64: 128, 128>}, {pipeline_mode = #tpu.pipeline_mode<synchronous>, transform_indices = @transform_10, window_bounds = array<i64: 1, 128>}, {pipeline_mode = #tpu.pipeline_mode<synchronous>, transform_indices = @transform_11, window_bounds = array<i64: 1, 128>}, {pipeline_mode = #tpu.pipeline_mode<synchronous>, transform_indices = @transform_12, window_bounds = array<i64: 1, 128>}, {pipeline_mode = #tpu.pipeline_mode<synchronous>, transform_indices = @transform_13, window_bounds = array<i64: 1, 128>}, {pipeline_mode = #tpu.pipeline_mode<synchronous>, transform_indices = @transform_14, window_bounds = array<i64: 1, 128>}, {pipeline_mode = #tpu.pipeline_mode<synchronous>, transform_indices = @transform_15, window_bounds = array<i64: 1, 128>}, {pipeline_mode = #tpu.pipeline_mode<synchronous>, transform_indices = @transform_16, window_bounds = array<i64: 1, 128>}, {pipeline_mode = #tpu.pipeline_mode<synchronous>, transform_indices = @transform_17, window_bounds = array<i64: 1, 128>}, {pipeline_mode = #tpu.pipeline_mode<synchronous>, transform_indices = @transform_18, window_bounds = array<i64: 1, 128>}, {transform_indices = @transform_19, window_bounds = array<i64: 8, 128>}]} {
    %c0 = arith.constant 0 : index
    %c0_0 = arith.constant 0 : index
    %0 = vector.load %arg1[%c0, %c0_0] : memref<8x4xf32, #tpu.memory_space<vmem>>, vector<8x4xf32>
    %1 = arith.truncf %0 : vector<8x4xf32> to vector<8x4xbf16>
    %2 = arith.extf %1 : vector<8x4xbf16> to vector<8x4xf32>
    %cst = arith.constant 0.000000e+00 : f32
    %3 = vector.broadcast %cst : f32 to vector<8x128xf32>
    %4 = vector.extract_strided_slice %2 {offsets = [0, 0], sizes = [8, 1], strides = [1, 1]} : vector<8x4xf32> to vector<8x1xf32>
    %c0_1 = arith.constant 0 : index
    %c0_2 = arith.constant 0 : index
    %5 = vector.load %arg2[%c0_1, %c0_2] : memref<4x128xbf16, #tpu.memory_space<vmem>>, vector<1x128xbf16>
    %6 = arith.extf %5 : vector<1x128xbf16> to vector<1x128xf32>
    %7 = vector.broadcast %4 : vector<8x1xf32> to vector<8x128xf32>
    %8 = vector.broadcast %6 : vector<1x128xf32> to vector<8x128xf32>
    %9 = arith.mulf %7, %8 : vector<8x128xf32>
    %10 = arith.addf %3, %9 : vector<8x128xf32>
    %11 = vector.extract_strided_slice %2 {offsets = [0, 1], sizes = [8, 1], strides = [1, 1]} : vector<8x4xf32> to vector<8x1xf32>
    %c1 = arith.constant 1 : index
    %c0_3 = arith.constant 0 : index
    %12 = vector.load %arg2[%c1, %c0_3] : memref<4x128xbf16, #tpu.memory_space<vmem>>, vector<1x128xbf16>
    %13 = arith.extf %12 : vector<1x128xbf16> to vector<1x128xf32>
    %14 = vector.broadcast %11 : vector<8x1xf32> to vector<8x128xf32>
    %15 = vector.broadcast %13 : vector<1x128xf32> to vector<8x128xf32>
    %16 = arith.mulf %14, %15 : vector<8x128xf32>
    %17 = arith.addf %10, %16 : vector<8x128xf32>
    %18 = vector.extract_strided_slice %2 {offsets = [0, 2], sizes = [8, 1], strides = [1, 1]} : vector<8x4xf32> to vector<8x1xf32>
    %c2 = arith.constant 2 : index
    %c0_4 = arith.constant 0 : index
    %19 = vector.load %arg2[%c2, %c0_4] : memref<4x128xbf16, #tpu.memory_space<vmem>>, vector<1x128xbf16>
    %20 = arith.extf %19 : vector<1x128xbf16> to vector<1x128xf32>
    %21 = vector.broadcast %18 : vector<8x1xf32> to vector<8x128xf32>
    %22 = vector.broadcast %20 : vector<1x128xf32> to vector<8x128xf32>
    %23 = arith.mulf %21, %22 : vector<8x128xf32>
    %24 = arith.addf %17, %23 : vector<8x128xf32>
    %25 = vector.extract_strided_slice %2 {offsets = [0, 3], sizes = [8, 1], strides = [1, 1]} : vector<8x4xf32> to vector<8x1xf32>
    %c3 = arith.constant 3 : index
    %c0_5 = arith.constant 0 : index
    %26 = vector.load %arg2[%c3, %c0_5] : memref<4x128xbf16, #tpu.memory_space<vmem>>, vector<1x128xbf16>
    %27 = arith.extf %26 : vector<1x128xbf16> to vector<1x128xf32>
    %28 = vector.broadcast %25 : vector<8x1xf32> to vector<8x128xf32>
    %29 = vector.broadcast %27 : vector<1x128xf32> to vector<8x128xf32>
    %30 = arith.mulf %28, %29 : vector<8x128xf32>
    %31 = arith.addf %24, %30 : vector<8x128xf32>
    %c0_6 = arith.constant 0 : index
    %c0_7 = arith.constant 0 : index
    %32 = vector.load %arg11[%c0_6, %c0_7] : memref<1x128xf32, #tpu.memory_space<vmem>>, vector<1x128xf32>
    %33 = vector.broadcast %32 : vector<1x128xf32> to vector<8x128xf32>
    %34 = arith.addf %31, %33 : vector<8x128xf32>
    %35 = math.sin %34 : vector<8x128xf32>
    %36 = arith.truncf %35 : vector<8x128xf32> to vector<8x128xbf16>
    %c0_8 = arith.constant 0 : index
    %c0_9 = arith.constant 0 : index
    %37 = vector.load %arg3[%c0_8, %c0_9] : memref<128x128xbf16, #tpu.memory_space<vmem>>, vector<128x128xbf16>
    %cst_10 = arith.constant dense<0.000000e+00> : vector<8x128xf32>
    %38 = tpu.matmul %36, %37, %cst_10 {dimension_numbers = #tpu.dot_dimension_numbers<[1], [0], [0], [1], [0, 0, 1, 1], [], []>} : vector<8x128xbf16>, vector<128x128xbf16>, vector<8x128xf32> -> vector<8x128xf32>
    %c0_11 = arith.constant 0 : index
    %c0_12 = arith.constant 0 : index
    %39 = vector.load %arg12[%c0_11, %c0_12] : memref<1x128xf32, #tpu.memory_space<vmem>>, vector<1x128xf32>
    %40 = vector.broadcast %39 : vector<1x128xf32> to vector<8x128xf32>
    %41 = arith.addf %38, %40 : vector<8x128xf32>
    %42 = math.sin %41 : vector<8x128xf32>
    %43 = arith.addf %35, %42 : vector<8x128xf32>
    %44 = arith.truncf %43 : vector<8x128xf32> to vector<8x128xbf16>
    %c0_13 = arith.constant 0 : index
    %c0_14 = arith.constant 0 : index
    %45 = vector.load %arg4[%c0_13, %c0_14] : memref<128x128xbf16, #tpu.memory_space<vmem>>, vector<128x128xbf16>
    %cst_15 = arith.constant dense<0.000000e+00> : vector<8x128xf32>
    %46 = tpu.matmul %44, %45, %cst_15 {dimension_numbers = #tpu.dot_dimension_numbers<[1], [0], [0], [1], [0, 0, 1, 1], [], []>} : vector<8x128xbf16>, vector<128x128xbf16>, vector<8x128xf32> -> vector<8x128xf32>
    %c0_16 = arith.constant 0 : index
    %c0_17 = arith.constant 0 : index
    %47 = vector.load %arg13[%c0_16, %c0_17] : memref<1x128xf32, #tpu.memory_space<vmem>>, vector<1x128xf32>
    %48 = vector.broadcast %47 : vector<1x128xf32> to vector<8x128xf32>
    %49 = arith.addf %46, %48 : vector<8x128xf32>
    %cst_18 = arith.constant 5.000000e-01 : f32
    %50 = vector.broadcast %cst_18 : f32 to vector<8x128xf32>
    %51 = arith.mulf %50, %49 : vector<8x128xf32>
    %cst_19 = arith.constant 0.707106769 : f32
    %52 = vector.broadcast %cst_19 : f32 to vector<8x128xf32>
    %53 = arith.mulf %49, %52 : vector<8x128xf32>
    %54 = math.erf %53 : vector<8x128xf32>
    %cst_20 = arith.constant 1.000000e+00 : f32
    %55 = vector.broadcast %cst_20 : f32 to vector<8x128xf32>
    %56 = arith.addf %55, %54 : vector<8x128xf32>
    %57 = arith.mulf %51, %56 : vector<8x128xf32>
    %58 = arith.addf %43, %57 : vector<8x128xf32>
    %59 = arith.truncf %58 : vector<8x128xf32> to vector<8x128xbf16>
    %c0_21 = arith.constant 0 : index
    %c0_22 = arith.constant 0 : index
    %60 = vector.load %arg5[%c0_21, %c0_22] : memref<128x128xbf16, #tpu.memory_space<vmem>>, vector<128x128xbf16>
    %cst_23 = arith.constant dense<0.000000e+00> : vector<8x128xf32>
    %61 = tpu.matmul %59, %60, %cst_23 {dimension_numbers = #tpu.dot_dimension_numbers<[1], [0], [0], [1], [0, 0, 1, 1], [], []>} : vector<8x128xbf16>, vector<128x128xbf16>, vector<8x128xf32> -> vector<8x128xf32>
    %c0_24 = arith.constant 0 : index
    %c0_25 = arith.constant 0 : index
    %62 = vector.load %arg14[%c0_24, %c0_25] : memref<1x128xf32, #tpu.memory_space<vmem>>, vector<1x128xf32>
    %63 = vector.broadcast %62 : vector<1x128xf32> to vector<8x128xf32>
    %64 = arith.addf %61, %63 : vector<8x128xf32>
    %cst_26 = arith.constant 5.000000e-01 : f32
    %65 = vector.broadcast %cst_26 : f32 to vector<8x128xf32>
    %66 = arith.mulf %65, %64 : vector<8x128xf32>
    %cst_27 = arith.constant 0.707106769 : f32
    %67 = vector.broadcast %cst_27 : f32 to vector<8x128xf32>
    %68 = arith.mulf %64, %67 : vector<8x128xf32>
    %69 = math.erf %68 : vector<8x128xf32>
    %cst_28 = arith.constant 1.000000e+00 : f32
    %70 = vector.broadcast %cst_28 : f32 to vector<8x128xf32>
    %71 = arith.addf %70, %69 : vector<8x128xf32>
    %72 = arith.mulf %66, %71 : vector<8x128xf32>
    %73 = arith.addf %58, %72 : vector<8x128xf32>
    %74 = arith.truncf %73 : vector<8x128xf32> to vector<8x128xbf16>
    %c0_29 = arith.constant 0 : index
    %c0_30 = arith.constant 0 : index
    %75 = vector.load %arg6[%c0_29, %c0_30] : memref<128x128xbf16, #tpu.memory_space<vmem>>, vector<128x128xbf16>
    %cst_31 = arith.constant dense<0.000000e+00> : vector<8x128xf32>
    %76 = tpu.matmul %74, %75, %cst_31 {dimension_numbers = #tpu.dot_dimension_numbers<[1], [0], [0], [1], [0, 0, 1, 1], [], []>} : vector<8x128xbf16>, vector<128x128xbf16>, vector<8x128xf32> -> vector<8x128xf32>
    %c0_32 = arith.constant 0 : index
    %c0_33 = arith.constant 0 : index
    %77 = vector.load %arg15[%c0_32, %c0_33] : memref<1x128xf32, #tpu.memory_space<vmem>>, vector<1x128xf32>
    %78 = vector.broadcast %77 : vector<1x128xf32> to vector<8x128xf32>
    %79 = arith.addf %76, %78 : vector<8x128xf32>
    %cst_34 = arith.constant 5.000000e-01 : f32
    %80 = vector.broadcast %cst_34 : f32 to vector<8x128xf32>
    %81 = arith.mulf %80, %79 : vector<8x128xf32>
    %cst_35 = arith.constant 0.707106769 : f32
    %82 = vector.broadcast %cst_35 : f32 to vector<8x128xf32>
    %83 = arith.mulf %79, %82 : vector<8x128xf32>
    %84 = math.erf %83 : vector<8x128xf32>
    %cst_36 = arith.constant 1.000000e+00 : f32
    %85 = vector.broadcast %cst_36 : f32 to vector<8x128xf32>
    %86 = arith.addf %85, %84 : vector<8x128xf32>
    %87 = arith.mulf %81, %86 : vector<8x128xf32>
    %88 = arith.truncf %87 : vector<8x128xf32> to vector<8x128xbf16>
    %c0_37 = arith.constant 0 : index
    %c0_38 = arith.constant 0 : index
    %89 = vector.load %arg7[%c0_37, %c0_38] : memref<128x128xbf16, #tpu.memory_space<vmem>>, vector<128x128xbf16>
    %cst_39 = arith.constant dense<0.000000e+00> : vector<8x128xf32>
    %90 = tpu.matmul %88, %89, %cst_39 {dimension_numbers = #tpu.dot_dimension_numbers<[1], [0], [0], [1], [0, 0, 1, 1], [], []>} : vector<8x128xbf16>, vector<128x128xbf16>, vector<8x128xf32> -> vector<8x128xf32>
    %c0_40 = arith.constant 0 : index
    %c0_41 = arith.constant 0 : index
    %91 = vector.load %arg16[%c0_40, %c0_41] : memref<1x128xf32, #tpu.memory_space<vmem>>, vector<1x128xf32>
    %92 = vector.broadcast %91 : vector<1x128xf32> to vector<8x128xf32>
    %93 = arith.addf %90, %92 : vector<8x128xf32>
    %94 = math.sin %93 : vector<8x128xf32>
    %95 = arith.addf %87, %94 : vector<8x128xf32>
    %96 = arith.truncf %95 : vector<8x128xf32> to vector<8x128xbf16>
    %c0_42 = arith.constant 0 : index
    %c0_43 = arith.constant 0 : index
    %97 = vector.load %arg8[%c0_42, %c0_43] : memref<128x128xbf16, #tpu.memory_space<vmem>>, vector<128x128xbf16>
    %cst_44 = arith.constant dense<0.000000e+00> : vector<8x128xf32>
    %98 = tpu.matmul %96, %97, %cst_44 {dimension_numbers = #tpu.dot_dimension_numbers<[1], [0], [0], [1], [0, 0, 1, 1], [], []>} : vector<8x128xbf16>, vector<128x128xbf16>, vector<8x128xf32> -> vector<8x128xf32>
    %c0_45 = arith.constant 0 : index
    %c0_46 = arith.constant 0 : index
    %99 = vector.load %arg17[%c0_45, %c0_46] : memref<1x128xf32, #tpu.memory_space<vmem>>, vector<1x128xf32>
    %100 = vector.broadcast %99 : vector<1x128xf32> to vector<8x128xf32>
    %101 = arith.addf %98, %100 : vector<8x128xf32>
    %cst_47 = arith.constant 5.000000e-01 : f32
    %102 = vector.broadcast %cst_47 : f32 to vector<8x128xf32>
    %103 = arith.mulf %102, %101 : vector<8x128xf32>
    %cst_48 = arith.constant 0.707106769 : f32
    %104 = vector.broadcast %cst_48 : f32 to vector<8x128xf32>
    %105 = arith.mulf %101, %104 : vector<8x128xf32>
    %106 = math.erf %105 : vector<8x128xf32>
    %cst_49 = arith.constant 1.000000e+00 : f32
    %107 = vector.broadcast %cst_49 : f32 to vector<8x128xf32>
    %108 = arith.addf %107, %106 : vector<8x128xf32>
    %109 = arith.mulf %103, %108 : vector<8x128xf32>
    %110 = arith.addf %95, %109 : vector<8x128xf32>
    %111 = arith.truncf %110 : vector<8x128xf32> to vector<8x128xbf16>
    %c0_50 = arith.constant 0 : index
    %c0_51 = arith.constant 0 : index
    %112 = vector.load %arg9[%c0_50, %c0_51] : memref<128x128xbf16, #tpu.memory_space<vmem>>, vector<128x128xbf16>
    %cst_52 = arith.constant dense<0.000000e+00> : vector<8x128xf32>
    %113 = tpu.matmul %111, %112, %cst_52 {dimension_numbers = #tpu.dot_dimension_numbers<[1], [0], [0], [1], [0, 0, 1, 1], [], []>} : vector<8x128xbf16>, vector<128x128xbf16>, vector<8x128xf32> -> vector<8x128xf32>
    %c0_53 = arith.constant 0 : index
    %c0_54 = arith.constant 0 : index
    %114 = vector.load %arg18[%c0_53, %c0_54] : memref<1x128xf32, #tpu.memory_space<vmem>>, vector<1x128xf32>
    %115 = vector.broadcast %114 : vector<1x128xf32> to vector<8x128xf32>
    %116 = arith.addf %113, %115 : vector<8x128xf32>
    %cst_55 = arith.constant 5.000000e-01 : f32
    %117 = vector.broadcast %cst_55 : f32 to vector<8x128xf32>
    %118 = arith.mulf %117, %116 : vector<8x128xf32>
    %cst_56 = arith.constant 0.707106769 : f32
    %119 = vector.broadcast %cst_56 : f32 to vector<8x128xf32>
    %120 = arith.mulf %116, %119 : vector<8x128xf32>
    %121 = math.erf %120 : vector<8x128xf32>
    %cst_57 = arith.constant 1.000000e+00 : f32
    %122 = vector.broadcast %cst_57 : f32 to vector<8x128xf32>
    %123 = arith.addf %122, %121 : vector<8x128xf32>
    %124 = arith.mulf %118, %123 : vector<8x128xf32>
    %125 = arith.addf %110, %124 : vector<8x128xf32>
    %126 = arith.truncf %125 : vector<8x128xf32> to vector<8x128xbf16>
    %c0_58 = arith.constant 0 : index
    %c0_59 = arith.constant 0 : index
    %127 = vector.load %arg10[%c0_58, %c0_59] : memref<128x128xbf16, #tpu.memory_space<vmem>>, vector<128x128xbf16>
    %cst_60 = arith.constant dense<0.000000e+00> : vector<8x128xf32>
    %128 = tpu.matmul %126, %127, %cst_60 {dimension_numbers = #tpu.dot_dimension_numbers<[1], [0], [0], [1], [0, 0, 1, 1], [], []>} : vector<8x128xbf16>, vector<128x128xbf16>, vector<8x128xf32> -> vector<8x128xf32>
    %c0_61 = arith.constant 0 : index
    %c0_62 = arith.constant 0 : index
    %129 = vector.load %arg19[%c0_61, %c0_62] : memref<1x128xf32, #tpu.memory_space<vmem>>, vector<1x128xf32>
    %130 = vector.broadcast %129 : vector<1x128xf32> to vector<8x128xf32>
    %131 = arith.addf %128, %130 : vector<8x128xf32>
    %c0_63 = arith.constant 0 : index
    %c0_64 = arith.constant 0 : index
    %132 = vector.load %arg20[%c0_63, %c0_64] : memref<8x128xf32, #tpu.memory_space<vmem>>, vector<8x128xf32>
    tpu.vector_store %arg20[%c0_63, %c0_64], %131 {strides = array<i32>} : memref<8x128xf32, #tpu.memory_space<vmem>>, vector<8x128xf32>,
    return
  }
  func.func @transform_0(%arg0: i32) -> (i32, i32) {
    %c0_i32 = arith.constant 0 : i32
    %c0_i32_0 = arith.constant 0 : i32
    return %arg0, %c0_i32 : i32, i32
  }
  func.func @transform_1(%arg0: i32) -> (i32, i32) {
    %c0_i32 = arith.constant 0 : i32
    %c0_i32_0 = arith.constant 0 : i32
    %c0_i32_1 = arith.constant 0 : i32
    return %c0_i32, %c0_i32_0 : i32, i32
  }
  func.func @transform_2(%arg0: i32) -> (i32, i32) {
    %c0_i32 = arith.constant 0 : i32
    %c0_i32_0 = arith.constant 0 : i32
    %c0_i32_1 = arith.constant 0 : i32
    return %c0_i32, %c0_i32_0 : i32, i32
  }
  func.func @transform_3(%arg0: i32) -> (i32, i32) {
    %c0_i32 = arith.constant 0 : i32
    %c0_i32_0 = arith.constant 0 : i32
    %c0_i32_1 = arith.constant 0 : i32
    return %c0_i32, %c0_i32_0 : i32, i32
  }
  func.func @transform_4(%arg0: i32) -> (i32, i32) {
    %c0_i32 = arith.constant 0 : i32
    %c0_i32_0 = arith.constant 0 : i32
    %c0_i32_1 = arith.constant 0 : i32
    return %c0_i32, %c0_i32_0 : i32, i32
  }
  func.func @transform_5(%arg0: i32) -> (i32, i32) {
    %c0_i32 = arith.constant 0 : i32
    %c0_i32_0 = arith.constant 0 : i32
    %c0_i32_1 = arith.constant 0 : i32
    return %c0_i32, %c0_i32_0 : i32, i32
  }
  func.func @transform_6(%arg0: i32) -> (i32, i32) {
    %c0_i32 = arith.constant 0 : i32
    %c0_i32_0 = arith.constant 0 : i32
    %c0_i32_1 = arith.constant 0 : i32
    return %c0_i32, %c0_i32_0 : i32, i32
  }
  func.func @transform_7(%arg0: i32) -> (i32, i32) {
    %c0_i32 = arith.constant 0 : i32
    %c0_i32_0 = arith.constant 0 : i32
    %c0_i32_1 = arith.constant 0 : i32
    return %c0_i32, %c0_i32_0 : i32, i32
  }
  func.func @transform_8(%arg0: i32) -> (i32, i32) {
    %c0_i32 = arith.constant 0 : i32
    %c0_i32_0 = arith.constant 0 : i32
    %c0_i32_1 = arith.constant 0 : i32
    return %c0_i32, %c0_i32_0 : i32, i32
  }
  func.func @transform_9(%arg0: i32) -> (i32, i32) {
    %c0_i32 = arith.constant 0 : i32
    %c0_i32_0 = arith.constant 0 : i32
    %c0_i32_1 = arith.constant 0 : i32
    return %c0_i32, %c0_i32_0 : i32, i32
  }
  func.func @transform_10(%arg0: i32) -> (i32, i32) {
    %c0_i32 = arith.constant 0 : i32
    %c0_i32_0 = arith.constant 0 : i32
    %c0_i32_1 = arith.constant 0 : i32
    return %c0_i32, %c0_i32_0 : i32, i32
  }
  func.func @transform_11(%arg0: i32) -> (i32, i32) {
    %c0_i32 = arith.constant 0 : i32
    %c0_i32_0 = arith.constant 0 : i32
    %c0_i32_1 = arith.constant 0 : i32
    return %c0_i32, %c0_i32_0 : i32, i32
  }
  func.func @transform_12(%arg0: i32) -> (i32, i32) {
    %c0_i32 = arith.constant 0 : i32
    %c0_i32_0 = arith.constant 0 : i32
    %c0_i32_1 = arith.constant 0 : i32
    return %c0_i32, %c0_i32_0 : i32, i32
  }
  func.func @transform_13(%arg0: i32) -> (i32, i32) {
    %c0_i32 = arith.constant 0 : i32
    %c0_i32_0 = arith.constant 0 : i32
    %c0_i32_1 = arith.constant 0 : i32
    return %c0_i32, %c0_i32_0 : i32, i32
  }
  func.func @transform_14(%arg0: i32) -> (i32, i32) {
    %c0_i32 = arith.constant 0 : i32
    %c0_i32_0 = arith.constant 0 : i32
    %c0_i32_1 = arith.constant 0 : i32
    return %c0_i32, %c0_i32_0 : i32, i32
  }
  func.func @transform_15(%arg0: i32) -> (i32, i32) {
    %c0_i32 = arith.constant 0 : i32
    %c0_i32_0 = arith.constant 0 : i32
    %c0_i32_1 = arith.constant 0 : i32
    return %c0_i32, %c0_i32_0 : i32, i32
  }
  func.func @transform_16(%arg0: i32) -> (i32, i32) {
    %c0_i32 = arith.constant 0 : i32
    %c0_i32_0 = arith.constant 0 : i32
    %c0_i32_1 = arith.constant 0 : i32
    return %c0_i32, %c0_i32_0 : i32, i32
  }
  func.func @transform_17(%arg0: i32) -> (i32, i32) {
    %c0_i32 = arith.constant 0 : i32
    %c0_i32_0 = arith.constant 0 : i32
    %c0_i32_1 = arith.constant 0 : i32
    return %c0_i32, %c0_i32_0 : i32, i32
  }
  func.func @transform_18(%arg0: i32) -> (i32, i32) {
    %c0_i32 = arith.constant 0 : i32
    %c0_i32_0 = arith.constant 0 : i32
    %c0_i32_1 = arith.constant 0 : i32
    return %c0_i32, %c0_i32_0 : i32, i32
  }
  func.func @transform_19(%arg0: i32) -> (i32, i32) {
    %c0_i32 = arith.constant 0 : i32
    %c0_i32_0 = arith.constant 0 : i32
    return %arg0, %c0_i32 : i32, i32
  }
}

</mosaic_0001>

<bundles_post_ra>
// kernel: tpu_custom_call.1
= control target key start
LH: loop header
LB: loop body
LE: loop exit
PB: predicated region body
PF: predicated region fallthrough
CT: control target
= control target key end

     0   :  { %s2646_s0 = inlined_call_operand.vmem [shape: f32[8,4], index: 0, kind: input, shape index: {}]   ;;  %s2647_s1 = inlined_call_operand.vmem [shape: bf16[4,128], index: 1, kind: input, shape index: {}]   ;;  %s2648_s2 = inlined_call_operand.hbm [shape: bf16[128,128], index: 2, kind: input, shape index: {}]   ;;  %s2649_s3 = inlined_call_operand.hbm [shape: bf16[128,128], index: 3, kind: input, shape index: {}]   ;;  %s2650_s4 = inlined_call_operand.hbm [shape: bf16[128,128], index: 4, kind: input, shape index: {}]   ;;  %s2651_s5 = inlined_call_operand.hbm [shape: bf16[128,128], index: 5, kind: input, shape index: {}]   ;;  %s2652_s6 = inlined_call_operand.hbm [shape: bf16[128,128], index: 6, kind: input, shape index: {}]   ;;  %s2653_s7 = inlined_call_operand.hbm [shape: bf16[128,128], index: 7, kind: input, shape index: {}]   ;;  %s2654_s8 = inlined_call_operand.hbm [shape: bf16[128,128], index: 8, kind: input, shape index: {}]   ;;  %s2655_s9 = inlined_call_operand.hbm [shape: bf16[128,128], index: 9, kind: input, shape index: {}]   ;;  %s2656_s10 = inlined_call_operand.vmem [shape: f32[1,128], index: 10, kind: input, shape index: {}]   ;;  %s2657_s11 = inlined_call_operand.vmem [shape: f32[1,128], index: 11, kind: input, shape index: {}]   ;;  %s2658_s12 = inlined_call_operand.vmem [shape: f32[1,128], index: 12, kind: input, shape index: {}]   ;;  %s2659_s13 = inlined_call_operand.vmem [shape: f32[1,128], index: 13, kind: input, shape index: {}]   ;;  %s2660_s14 = inlined_call_operand.vmem [shape: f32[1,128], index: 14, kind: input, shape index: {}]   ;;  %s2661_s15 = inlined_call_operand.vmem [shape: f32[1,128], index: 15, kind: input, shape index: {}]   ;;  %s2662_s16 = inlined_call_operand.vmem [shape: f32[1,128], index: 16, kind: input, shape index: {}]   ;;  %s2663_s17 = inlined_call_operand.vmem [shape: f32[1,128], index: 17, kind: input, shape index: {}]   ;;  %s2664_s18 = inlined_call_operand.vmem [shape: f32[1,128], index: 18, kind: input, shape index: {}]   ;;  %s2665_s19 = inlined_call_operand.hbm [shape: f32[8,128], index: 19, kind: output, shape index: {}]  }
   0x1   :  { %2670 = sst [smem:[#allocation23_spill]] %s2646_s0 }
   0x2   :  { %2671 = sst [smem:[#allocation24_spill]] %s2647_s1 }
   0x3   :  { %2672 = sst [smem:[#allocation25_spill]] %s2648_s2 }
   0x4   :  { %2673 = sst [smem:[#allocation26_spill]] %s2649_s3 }
   0x5   :  { %2674 = sst [smem:[#allocation27_spill]] %s2665_s19 }
   0x6   :  { %24 = vsyncpa [#allocation3], 0 }
   0x7   :  { %25 = vsyncpa [#allocation6], 0 }
   0x8   :  { %26 = vsyncpa [#allocation9], 0 }
   0x9   :  { %27 = vsyncpa [#allocation12], 0 }
   0xa   :  { %28 = vsyncpa [#allocation15], 0 }
   0xb   :  { %29 = vsyncpa [#allocation4], 0  ;;  %s2141_s0 = smov [#allocation5]   ;;  %s2142_s20 = smov [#allocation8]  }
   0xc   :  { %s51_s30 = sshll.u32 %s2141_s0, 4  ;;  %s75_s21 = sshll.u32 %s2142_s20, 4  ;;  %s52_s30 = int_to_ptr.vmem [resolvable:$true] %s51_s30  ;;  %s2264_s21 = int_to_ptr.vmem [resolvable:$true] %s75_s21 }
   0xd   :  { %s2675_s2 = sld [smem:[#allocation26_spill]] }
  0x13   :  { %s1931_s23 = scalar_lea.hbm %s2675_s2, 1024 }
  0x14   :  { %p1932_p0 = scmp.ne.s32.totalorder %s2675_s2, %s1931_s23  ;;  %p1935_p1 = scmp.lt.u32.totalorder %s1931_s23, %s2675_s2 }
  0x16   :  { %p1937_p2 = pnand %p1935_p1, %p1932_p0 }
  0x18   :  { %1940 = shalt.err (!%p1937_p2)
}
  0x19   :  { %s1941_s27 = scalar_lea.vmem %s52_s30, 1024  ;;  %p1946_p4 = scmp.lt.s32.totalorder %s52_s30, %s52_s30 }
  0x1a   :  { %p1942_p3 = scmp.ne.s32.totalorder %s52_s30, %s1941_s27  ;;  %p1947_p5 = scmp.lt.s32.totalorder %s1941_s27, %s1941_s27 }
  0x1c   :  { %p1948_p6 = por %p1947_p5, %p1946_p4 }
  0x1e   :  { %p1949_p7 = pnand %p1948_p6, %p1942_p3 }
  0x20   :  { %1952 = shalt.err (!%p1949_p7)
}
  0x21   :  { %s2143_s28 = smov 64   ;;  %s2144_s29 = smov 4  }
  0x22   :  { %57 = dma.hbm_to_vmem [thread:$0]  %s2675_s2, 1024, %s52_s30, [#allocation6], %s2143_s28, %s2143_s28, %s2144_s29  }
  0x23   :  { %s1953_s23 = scalar_lea.hbm %s2651_s5, 1024 }
  0x24   :  { %p1954_p8 = scmp.ne.s32.totalorder %s2651_s5, %s1953_s23  ;;  %p1957_p9 = scmp.lt.u32.totalorder %s1953_s23, %s2651_s5 }
  0x26   :  { %p1959_p10 = pnand %p1957_p9, %p1954_p8 }
  0x28   :  { %1962 = shalt.err (!%p1959_p10)
}
  0x29   :  { %s1963_s27 = scalar_lea.vmem %s2264_s21, 1024  ;;  %p1968_p12 = scmp.lt.s32.totalorder %s2264_s21, %s2264_s21 }
  0x2a   :  { %p1964_p11 = scmp.ne.s32.totalorder %s2264_s21, %s1963_s27  ;;  %p1969_p13 = scmp.lt.s32.totalorder %s1963_s27, %s1963_s27 }
  0x2c   :  { %p1970_p0 = por %p1969_p13, %p1968_p12 }
  0x2e   :  { %p1971_p1 = pnand %p1970_p0, %p1964_p11 }
  0x30   :  { %1974 = shalt.err (!%p1971_p1)
}
  0x31   :  { %81 = dma.hbm_to_vmem [thread:$0]  %s2651_s5, 1024, %s2264_s21, [#allocation9], %s2143_s28, %s2143_s28, %s2144_s29  }
  0x32   :  { %s2145_s0 = smov [#allocation11]   ;;  %s2146_s1 = smov [#allocation2]  }
  0x33   :  { %s99_s20 = sshll.u32 %s2145_s0, 4  ;;  %s39_s22 = sshll.u32 %s2146_s1, 4  ;;  %s100_s20 = int_to_ptr.vmem [resolvable:$true] %s99_s20  ;;  %s2301_s22 = int_to_ptr.vmem [resolvable:$true] %s39_s22 }
  0x34   :  { %s1975_s25 = scalar_lea.hbm %s2653_s7, 1024 }
  0x35   :  { %p1976_p2 = scmp.ne.s32.totalorder %s2653_s7, %s1975_s25  ;;  %p1979_p3 = scmp.lt.u32.totalorder %s1975_s25, %s2653_s7 }
  0x37   :  { %p1981_p4 = pnand %p1979_p3, %p1976_p2 }
  0x39   :  { %1984 = shalt.err (!%p1981_p4)
}
  0x3a   :  { %s1985_s5 = scalar_lea.vmem %s100_s20, 1024  ;;  %p1990_p6 = scmp.lt.s32.totalorder %s100_s20, %s100_s20 }
  0x3b   :  { %p1986_p5 = scmp.ne.s32.totalorder %s100_s20, %s1985_s5  ;;  %p1991_p7 = scmp.lt.s32.totalorder %s1985_s5, %s1985_s5 }
  0x3d   :  { %p1992_p8 = por %p1991_p7, %p1990_p6 }
  0x3f   :  { %p1993_p9 = pnand %p1992_p8, %p1986_p5 }
  0x41   :  { %1996 = shalt.err (!%p1993_p9)
}
  0x42   :  { %105 = dma.hbm_to_vmem [thread:$0]  %s2653_s7, 1024, %s100_s20, [#allocation12], %s2143_s28, %s2143_s28, %s2144_s29  }
  0x43   :  { %s2676_s19 = sld [smem:[#allocation25_spill]] }
  0x49   :  { %s1997_s1 = scalar_lea.hbm %s2676_s19, 1024 }
  0x4a   :  { %p1998_p10 = scmp.ne.s32.totalorder %s2676_s19, %s1997_s1  ;;  %p2001_p11 = scmp.lt.u32.totalorder %s1997_s1, %s2676_s19 }
  0x4c   :  { %p2003_p12 = pnand %p2001_p11, %p1998_p10 }
  0x4e   :  { %2006 = shalt.err (!%p2003_p12)
}
  0x4f   :  { %s2007_s26 = scalar_lea.vmem %s2301_s22, 1024  ;;  %p2012_p0 = scmp.lt.s32.totalorder %s2301_s22, %s2301_s22 }
  0x50   :  { %p2008_p13 = scmp.ne.s32.totalorder %s2301_s22, %s2007_s26  ;;  %p2013_p1 = scmp.lt.s32.totalorder %s2007_s26, %s2007_s26 }
  0x52   :  { %p2014_p2 = por %p2013_p1, %p2012_p0 }
  0x54   :  { %p2015_p3 = pnand %p2014_p2, %p2008_p13 }
  0x56   :  { %2018 = shalt.err (!%p2015_p3)
}
  0x57   :  { %45 = dma.hbm_to_vmem [thread:$0]  %s2676_s19, 1024, %s2301_s22, [#allocation3], %s2143_s28, %s2143_s28, %s2144_s29  }
  0x58   :  { %s2147_s27 = smov [#allocation7]   ;;  %s2148_s21 = smov [#allocation10]  }
  0x59   :  { %s63_s5 = sshll.u32 %s2147_s27, 4  ;;  %s87_s30 = sshll.u32 %s2148_s21, 4  ;;  %s64_s5 = int_to_ptr.vmem [resolvable:$true] %s63_s5  ;;  %s2338_s30 = int_to_ptr.vmem [resolvable:$true] %s87_s30 }
  0x5a   :  { %s2019_s1 = scalar_lea.hbm %s2650_s4, 1024 }
  0x5b   :  { %p2020_p4 = scmp.ne.s32.totalorder %s2650_s4, %s2019_s1  ;;  %p2023_p5 = scmp.lt.u32.totalorder %s2019_s1, %s2650_s4 }
  0x5d   :  { %p2025_p6 = pnand %p2023_p5, %p2020_p4 }
  0x5f   :  { %2028 = shalt.err (!%p2025_p6)
}
  0x60   :  { %s2029_s22 = scalar_lea.vmem %s64_s5, 1024  ;;  %p2034_p8 = scmp.lt.s32.totalorder %s64_s5, %s64_s5 }
  0x61   :  { %p2030_p7 = scmp.ne.s32.totalorder %s64_s5, %s2029_s22  ;;  %p2035_p9 = scmp.lt.s32.totalorder %s2029_s22, %s2029_s22 }
  0x63   :  { %p2036_p10 = por %p2035_p9, %p2034_p8 }
  0x65   :  { %p2037_p11 = pnand %p2036_p10, %p2030_p7 }
  0x67   :  { %2040 = shalt.err (!%p2037_p11)
}
  0x68   :  { %69 = dma.hbm_to_vmem [thread:$0]  %s2650_s4, 1024, %s64_s5, [#allocation6], %s2143_s28, %s2143_s28, %s2144_s29  }
  0x69   :  { %s2041_s27 = scalar_lea.hbm %s2652_s6, 1024 }
  0x6a   :  { %p2042_p12 = scmp.ne.s32.totalorder %s2652_s6, %s2041_s27  ;;  %p2045_p13 = scmp.lt.u32.totalorder %s2041_s27, %s2652_s6 }
  0x6c   :  { %p2047_p0 = pnand %p2045_p13, %p2042_p12 }
  0x6e   :  { %2050 = shalt.err (!%p2047_p0)
}
  0x6f   :  { %s2051_s23 = scalar_lea.vmem %s2338_s30, 1024  ;;  %p2056_p2 = scmp.lt.s32.totalorder %s2338_s30, %s2338_s30 }
  0x70   :  { %p2052_p1 = scmp.ne.s32.totalorder %s2338_s30, %s2051_s23  ;;  %p2057_p3 = scmp.lt.s32.totalorder %s2051_s23, %s2051_s23 }
  0x72   :  { %p2058_p4 = por %p2057_p3, %p2056_p2 }
  0x74   :  { %p2059_p5 = pnand %p2058_p4, %p2052_p1 }
  0x76   :  { %2062 = shalt.err (!%p2059_p5)
}
  0x77   :  { %93 = dma.hbm_to_vmem [thread:$0]  %s2652_s6, 1024, %s2338_s30, [#allocation9], %s2143_s28, %s2143_s28, %s2144_s29  }
  0x78   :  { %s2149_s24 = smov [#allocation13]   ;;  %s2150_s3 = smov [#allocation14]  }
  0x79   :  { %s111_s25 = sshll.u32 %s2149_s24, 4  ;;  %s123_s22 = sshll.u32 %s2150_s3, 4  ;;  %s112_s25 = int_to_ptr.vmem [resolvable:$true] %s111_s25  ;;  %s2375_s22 = int_to_ptr.vmem [resolvable:$true] %s123_s22 }
  0x7a   :  { %s2063_s7 = scalar_lea.hbm %s2654_s8, 1024 }
  0x7b   :  { %p2064_p6 = scmp.ne.s32.totalorder %s2654_s8, %s2063_s7  ;;  %p2067_p7 = scmp.lt.u32.totalorder %s2063_s7, %s2654_s8 }
  0x7d   :  { %p2069_p8 = pnand %p2067_p7, %p2064_p6 }
  0x7f   :  { %2072 = shalt.err (!%p2069_p8)
}
  0x80   :  { %s2073_s6 = scalar_lea.vmem %s112_s25, 1024  ;;  %p2078_p10 = scmp.lt.s32.totalorder %s112_s25, %s112_s25 }
  0x81   :  { %p2074_p9 = scmp.ne.s32.totalorder %s112_s25, %s2073_s6  ;;  %p2079_p11 = scmp.lt.s32.totalorder %s2073_s6, %s2073_s6 }
  0x83   :  { %p2080_p12 = por %p2079_p11, %p2078_p10 }
  0x85   :  { %p2081_p13 = pnand %p2080_p12, %p2074_p9 }
  0x87   :  { %2084 = shalt.err (!%p2081_p13)
}
  0x88   :  { %117 = dma.hbm_to_vmem [thread:$0]  %s2654_s8, 1024, %s112_s25, [#allocation12], %s2143_s28, %s2143_s28, %s2144_s29  }
  0x89   :  { %s2085_s4 = scalar_lea.hbm %s2655_s9, 1024 }
  0x8a   :  { %p2086_p0 = scmp.ne.s32.totalorder %s2655_s9, %s2085_s4  ;;  %p2089_p1 = scmp.lt.u32.totalorder %s2085_s4, %s2655_s9 }
  0x8c   :  { %p2091_p2 = pnand %p2089_p1, %p2086_p0 }
  0x8e   :  { %2094 = shalt.err (!%p2091_p2)
}
  0x8f   :  { %s2095_s26 = scalar_lea.vmem %s2375_s22, 1024  ;;  %p2100_p4 = scmp.lt.s32.totalorder %s2375_s22, %s2375_s22 }
  0x90   :  { %p2096_p3 = scmp.ne.s32.totalorder %s2375_s22, %s2095_s26  ;;  %p2101_p5 = scmp.lt.s32.totalorder %s2095_s26, %s2095_s26 }
  0x92   :  { %p2102_p6 = por %p2101_p5, %p2100_p4 }
  0x94   :  { %p2103_p7 = pnand %p2102_p6, %p2096_p3 }
  0x96   :  { %2106 = shalt.err (!%p2103_p7)
}
  0x97   :  { %129 = dma.hbm_to_vmem [thread:$0]  %s2655_s9, 1024, %s2375_s22, [#allocation15], %s2143_s28, %s2143_s28, %s2144_s29  }
  0x98   :  { %2129 = dma.done.wait [#allocation3], 1024  }
  0x99   :  { %2130 = vsyncadd [#allocation3], 4294966272 }
  0x9a   :  { %2131 = dma.done.wait [#allocation6], 2048  }
  0x9b   :  { %2132 = vsyncadd [#allocation6], 4294965248 }
  0x9c   :  { %2133 = dma.done.wait [#allocation9], 2048  }
  0x9d   :  { %2134 = vsyncadd [#allocation9], 4294965248 }
  0x9e   :  { %2135 = dma.done.wait [#allocation12], 2048  }
  0x9f   :  { %2136 = vsyncadd [#allocation12], 4294965248 }
  0xa0   :  { %2137 = dma.done.wait [#allocation15], 1024  }
  0xa1   :  { %2138 = vsyncadd [#allocation15], 4294966272  ;;  %v2151_v0 = vmov 0   ;;  %v2152_v1 = vmov 2   ;;  %s2677_s27 = sld [smem:[#allocation23_spill]]  ;;  %v2153_v5 = vmov 1   ;;  %v183_v16 = vlaneseq }
  0xa2   :  { %1840 = vset.pattern.permute.xlu0 %v2151_v0  ;;  %1842 = vset.pattern.permute.xlu1 %v2152_v1  ;;  %v2154_v6 = vmov 3   ;;  %v1845_v7 = vld [vmem:[#allocation2] sm:$0xff]   ;;  %v2155_v8 = vmov 0.0   ;;  %vm2156_vm0 = vmmov 0   ;;  %v1846_v9 = vld [vmem:[#allocation2 + $0x8] sm:$0xff]   ;;  %v1847_v10 = vld [vmem:[#allocation2 + $0x10] sm:$0xff]  }
  0xa3   :  { %1645 = vmatprep.subr.bf16.mxu0 %v2155_v8  ;;  %1661 = vmatprep.mubr.msk.bf16.mxu0 %vm2156_vm0, %v2155_v8  ;;  %v1848_v11 = vld [vmem:[#allocation2 + $0x18] sm:$0xff]   ;;  %v1849_v12 = vld [vmem:[#allocation2 + $0x20] sm:$0xff]   ;;  %v1850_v13 = vld [vmem:[#allocation2 + $0x28] sm:$0xff]   ;;  %v184_v17 = vshrl.u32 %v183_v16, 7  ;;  %s2678_s29 = sld [smem:[#allocation24_spill]]  ;;  %s2163_s26 = smov [#allocation16]  }
  0xa4   :  { %1646 = vmatpush3.bf16.msra.mxu0 %v1845_v7  ;;  %1665 = vmatprep.subr.bf16.mxu1 %v2155_v8  ;;  %v1851_v14 = vld [vmem:[#allocation2 + $0x30] sm:$0xff]   ;;  %v1852_v15 = vld [vmem:[#allocation2 + $0x38] sm:$0xff]   ;;  %v1488_v40 = vld [vmem:[%s2656_s10] ss:$0 sm:$0xff]  ;;  %v2157_v54 = vmov 2102212464  }
  0xa5   :  { %1647 = vmatprep.subr.bf16.mxu0 %v2155_v8  ;;  %1681 = vmatprep.mubr.msk.bf16.mxu1 %vm2156_vm0, %v2155_v8  ;;  %v185_v21 = vsub.s32 0, %v184_v17  ;;  %v195_v22 = vsub.s32 1, %v184_v17  ;;  %v207_v25 = vsub.s32 2, %v184_v17  ;;  %v217_v27 = vsub.s32 3, %v184_v17 }
  0xa6   :  { %v2158_v56 = vmov 920167782   ;;  %v2159_v60 = vmov 1326507024   ;;  %v2160_v62 = vmov 683565275  }
  0xa7   :  { %v173_v2 = vld [vmem:[%s2677_s27] sm:$0xff]  ;;  %v2161_v0 = vmov 2475754826  }
  0xa8   :  { %v174_v3 = vpack.c.bf16 %v173_v2, %v173_v2  ;;  %1648 = vmatpush3.bf16.msra.mxu0 %v1846_v9 }
  0xa9   :  { %1649 = vmatprep.subr.bf16.mxu0 %v2155_v8  ;;  %v176_v18 = vld [vmem:[%s2678_s29] sm:$0x1]  ;;  %v199_v19 = vld [vmem:[%s2678_s29] sm:$0x2] }
  0xaa   :  { %v175_v4 = vunpack.c.l.bf16 %v174_v3  ;;  %v177_v20 = vunpack.c.l.bf16 %v176_v18  ;;  %v200_v24 = vunpack.c.l.bf16 %v199_v19  ;;  %v2162_v3 = vmov 2131351028  }
  0xac   :  { %180 = vperm.xlu0 %1840, %v175_v4   ;;  %202 = vperm.xlu1 %1842, %v175_v4   ;;  %v186_v28 = vrot.slane %v177_v20, %v185_v21  ;;  %v196_v29 = vrot.slane %v177_v20, %v195_v22  ;;  %v208_v30 = vrot.slane %v200_v24, %v207_v25 }
  0xad   :  { %1650 = vmatpush3.bf16.msra.mxu0 %v1847_v10  ;;  %v218_v31 = vrot.slane %v200_v24, %v217_v27 }
  0xae   :  { %1651 = vmatprep.subr.bf16.mxu0 %v2155_v8 }
  0xb0   :  { %1841 = vset.pattern.permute.xlu0 %v2153_v5  ;;  %1843 = vset.pattern.permute.xlu1 %v2154_v6 }
  0xb1   :  { %190 = vperm.xlu0 %1841, %v175_v4   ;;  %212 = vperm.xlu1 %1843, %v175_v4  }
  0xb2   :  { %1652 = vmatpush3.bf16.msra.mxu0 %v1848_v11 }
  0xb3   :  { %1653 = vmatprep.subr.bf16.mxu0 %v2155_v8 }
  0xb5   :  { %1844 = vset.pattern.permute.xlu0 %v2154_v6 }
  0xb6   :  { %1654 = vmatpush3.bf16.msra.mxu0 %v1849_v12 }
  0xb7   :  { %1655 = vmatprep.subr.bf16.mxu0 %v2155_v8 }
  0xba   :  { %1656 = vmatpush3.bf16.msra.mxu0 %v1850_v13 }
  0xbb   :  { %1657 = vmatprep.subr.bf16.mxu0 %v2155_v8 }
  0xbe   :  { %1658 = vmatpush3.bf16.msra.mxu0 %v1851_v14 }
  0xbf   :  { %1659 = vmatprep.subr.bf16.mxu0 %v2155_v8 }
  0xc2   :  { %1660 = vmatpush3.bf16.msra.mxu0 %v1852_v15 }
  0xc3   :  { %1685 = vmatprep.subr.bf16.mxu0 %v2155_v8 }
 0x12b   :  { %v181_v23 = vpop.permute.xlu0 %180  ;;  %v203_v26 = vpop.permute.xlu1 %202 }
 0x12c   :  { %v187_v34 = vmul.f32 %v186_v28, %v181_v23  ;;  %v209_v36 = vmul.f32 %v208_v30, %v203_v26 }
 0x130   :  { %v191_v32 = vpop.permute.xlu0 %190  ;;  %v213_v33 = vpop.permute.xlu1 %212 }
 0x131   :  { %v197_v35 = vmul.f32 %v196_v29, %v191_v32  ;;  %v219_v38 = vmul.f32 %v218_v31, %v213_v33 }
 0x133   :  { %v198_v37 = vadd.f32 %v197_v35, %v187_v34 }
 0x135   :  { %v210_v39 = vadd.f32 %v209_v36, %v198_v37 }
 0x137   :  { %v220_v41 = vadd.f32 %v219_v38, %v210_v39 }
 0x139   :  { %v2438_v42 = vadd.f32 %v1488_v40, %v220_v41 }
 0x13b   :  { %v232_v43 = vand.u32 2139095040, %v2438_v42  ;;  %v229_v44 = vand.u32 2147483647, %v2438_v42  ;;  %vm231_vm8 = vcmp.lt.s32.totalorder %v2438_v42, 0  ;;  %vm321_vm13 = vweird.f32 %v2438_v42 }
 0x13d   :  { %v233_v45 = vshrl.u32 %v232_v43, 23  ;;  %v236_v47 = vand.u32 8388607, %v229_v44  ;;  %vm230_vm9 = vcmp.le.f32.partialorder %v229_v44, 0.7853982 }
 0x13f   :  { %v1489_v46 = vadd.s32 4294967169, %v233_v45  ;;  %v237_v50 = vor.u32 8388608, %v236_v47 }
 0x141   :  { %v239_v48 = vadd.s32 1, %v1489_v46  ;;  %v277_v58 = vshll.u32 %v237_v50, 8 }
 0x143   :  { %vm240_vm1 = vcmp.gt.s32.totalorder %v239_v48, 0 }
 0x144   :  { %v241_v49 = vsel %vm240_vm1, %v239_v48, 0 }
 0x145   :  { %v243_v51 = vand.u32 31, %v241_v49  ;;  %v242_v52 = vshrl.u32 %v241_v49, 5 }
 0x147   :  { %v244_v53 = vsub.s32 32, %v243_v51  ;;  %v255_v55 = vshll.u32 %v2157_v54, %v243_v51  ;;  %v258_v57 = vshll.u32 %v2158_v56, %v243_v51  ;;  %v246_v63 = vshll.u32 %v2160_v62, %v243_v51 }
 0x148   :  { %v249_v2 = vshll.u32 %v2161_v0, %v243_v51  ;;  %v252_v5 = vshll.u32 %v2162_v3, %v243_v51  ;;  %vm264_vm2 = vcmp.lt.s32.totalorder %v242_v52, 4  ;;  %vm261_vm3 = vcmp.lt.s32.totalorder %v242_v52, 1 }
 0x149   :  { %v256_v59 = vshrl.u32 %v2158_v56, %v244_v53  ;;  %v259_v61 = vshrl.u32 %v2159_v60, %v244_v53  ;;  %v247_v1 = vshrl.u32 %v2161_v0, %v244_v53  ;;  %v250_v4 = vshrl.u32 %v2162_v3, %v244_v53 }
 0x14a   :  { %v253_v6 = vshrl.u32 %v2157_v54, %v244_v53  ;;  %v245_v11 = vshrl.u32 %v2160_v62, %v244_v53  ;;  %vm262_vm4 = vcmp.lt.s32.totalorder %v242_v52, 2  ;;  %vm263_vm5 = vcmp.lt.s32.totalorder %v242_v52, 3 }
 0x14b   :  { %v257_v7 = vor.u32 %v256_v59, %v255_v55  ;;  %v260_v9 = vor.u32 %v259_v61, %v258_v57  ;;  %v248_v10 = vor.u32 %v247_v1, %v246_v63  ;;  %v251_v12 = vor.u32 %v250_v4, %v249_v2 }
 0x14c   :  { %v254_v13 = vor.u32 %v253_v6, %v252_v5 }
 0x14d   :  { %v270_v14 = vsel %vm264_vm2, %v257_v7, 920167782  ;;  %v274_v15 = vsel %vm264_vm2, %v260_v9, 1326507024  ;;  %v269_v17 = vsel %vm261_vm3, %v248_v10, %v251_v12  ;;  %v265_v20 = vsel %vm261_vm3, %v245_v11, %v248_v10 }
 0x14e   :  { %v266_v16 = vsel %vm264_vm2, %v254_v13, 2102212464  ;;  %v271_v18 = vsel %vm263_vm5, %v254_v13, %v270_v14  ;;  %v273_v19 = vsel %vm261_vm3, %v251_v12, %v254_v13  ;;  %v275_v23 = vsel %vm263_vm5, %v257_v7, %v274_v15 }
 0x14f   :  { %v267_v21 = vsel %vm263_vm5, %v251_v12, %v266_v16  ;;  %v272_v22 = vsel %vm262_vm4, %v269_v17, %v271_v18  ;;  %v276_v24 = vsel %vm262_vm4, %v273_v19, %v275_v23  ;;  %v1853_v16 = vld [vmem:[#allocation5] sm:$0xff]   ;;  %v1854_v17 = vld [vmem:[#allocation5 + $0x8] sm:$0xff]   ;;  %v1855_v18 = vld [vmem:[#allocation5 + $0x10] sm:$0xff]  }
 0x150   :  { %v2455_v25 = vmul.u32.u64.low %v277_v58, %v272_v22  ;;  %v2456_v26 = vmul.u32.u64.high %v277_v58, %v272_v22, %v2455_v25  ;;  %v2458_v27 = vmul.u32.u64.low %v277_v58, %v276_v24  ;;  %v2459_v28 = vmul.u32.u64.high %v277_v58, %v276_v24, %v2458_v27  ;;  %1666 = vmatpush3.bf16.msra.mxu1 %v1853_v16  ;;  %v1857_v19 = vld [vmem:[#allocation5 + $0x20] sm:$0xff]   ;;  %v1860_v22 = vld [vmem:[#allocation5 + $0x38] sm:$0xff]   ;;  %v1862_v24 = vld [vmem:[#allocation7 + $0x8] sm:$0xff]  }
 0x151   :  { %v268_v29 = vsel %vm262_vm4, %v265_v20, %v267_v21  ;;  %1667 = vmatprep.subr.bf16.mxu1 %v2155_v8  ;;  %v1858_v20 = vld [vmem:[#allocation5 + $0x28] sm:$0xff]   ;;  %v1859_v21 = vld [vmem:[#allocation5 + $0x30] sm:$0xff]   ;;  %v1861_v23 = vld [vmem:[#allocation7] sm:$0xff]  }
 0x152   :  { %v287_v30 = vadd.s32 1, %v2456_v26  ;;  %v284_v31 = vmul.u32 %v277_v58, %v268_v29  ;;  %vm286_vm6 = vc.u32 %v2459_v28, %v2455_v25  ;;  %v285_v45 = vadd.s32 %v2455_v25, %v2459_v28  ;;  %v1493_v25 = vld [vmem:[%s2657_s11] ss:$0 sm:$0xff] }
 0x154   :  { %v288_v32 = vsel %vm286_vm6, %v287_v30, %v2456_v26  ;;  %1668 = vmatpush3.bf16.msra.mxu1 %v1854_v17 }
 0x155   :  { %v289_v33 = vadd.s32 %v288_v32, %v284_v31  ;;  %1669 = vmatprep.subr.bf16.mxu1 %v2155_v8 }
 0x157   :  { %v290_v34 = vadd.s32 536870912, %v289_v33 }
 0x158   :  { %1670 = vmatpush3.bf16.msra.mxu1 %v1855_v18 }
 0x159   :  { %v291_v35 = vshrl.u32 %v290_v34, 30  ;;  %1671 = vmatprep.subr.bf16.mxu1 %v2155_v8 }
 0x15b   :  { %v292_v36 = vshll.u32 %v291_v35, 30  ;;  %v315_v59 = vsub.s32 4, %v291_v35 }
 0x15d   :  { %v293_v37 = vsub.s32 %v289_v33, %v292_v36  ;;  %v316_v1 = vsel %vm231_vm8, %v315_v59, %v291_v35 }
 0x15e   :  { %v318_v4 = vsel %vm230_vm9, 0, %v316_v1 }
 0x15f   :  { %v295_v38 = vsub.s32 0, %v293_v37  ;;  %v322_v5 = vadd.s32 3, %v318_v4 }
 0x161   :  { %v1490_v39 = vmin.u32 %v295_v38, %v293_v37  ;;  %v323_v6 = vand.u32 3, %v322_v5 }
 0x163   :  { %v297_v40 = vclz %v1490_v39  ;;  %vm328_vm10 = vcmp.eq.s32.totalorder %v323_v6, 2  ;;  %vm325_vm11 = vcmp.eq.s32.totalorder %v323_v6, 0  ;;  %vm324_vm12 = vcmp.lt.s32.totalorder %v323_v6, 2 }
 0x165   :  { %v1491_v41 = vadd.s32 4294967294, %v297_v40 }
 0x167   :  { %vm1492_vm7 = vcmp.lt.s32.totalorder %v1491_v41, 0 }
 0x168   :  { %v300_v43 = vsel %vm1492_vm7, 0, %v1491_v41 }
 0x169   :  { %v301_v46 = vsub.s32 32, %v300_v43  ;;  %v305_v47 = vsub.s32 4294967266, %v300_v43  ;;  %v302_v48 = vshll.u32 %v293_v37, %v300_v43 }
 0x16b   :  { %v303_v49 = vshrl.u32 %v285_v45, %v301_v46  ;;  %v306_v50 = vadd.s32 127, %v305_v47 }
 0x16d   :  { %v304_v51 = vor.u32 %v303_v49, %v302_v48  ;;  %v307_v52 = vshll.u32 %v306_v50, 23 }
 0x16f   :  { %v308_v53 = vor.u32 4788187, %v307_v52  ;;  %v311_v57 = vcvt.s32.f32 %v304_v51 }
 0x171   :  { %v309_v55 = vand.u32 2147483647, %v308_v53 }
 0x173   :  { %v312_v58 = vmul.f32 %v311_v57, %v309_v55 }
 0x175   :  { %v313_v61 = vxor.u32 2147483648, %v312_v58 }
 0x177   :  { %v314_v63 = vsel %vm231_vm8, %v313_v61, %v312_v58 }
 0x178   :  { %v317_v2 = vsel %vm230_vm9, %v2438_v42, %v314_v63  ;;  %v1856_v42 = vld [vmem:[#allocation5 + $0x18] sm:$0xff]  }
 0x179   :  { %1909 = vcosq.f32 %v317_v2  ;;  %1672 = vmatpush3.bf16.msra.mxu1 %v1856_v42 }
 0x17a   :  { %1911 = vsinq.f32 %v317_v2  ;;  %1673 = vmatprep.subr.bf16.mxu1 %v2155_v8 }
 0x17d   :  { %1674 = vmatpush3.bf16.msra.mxu1 %v1857_v19 }
 0x17e   :  { %1675 = vmatprep.subr.bf16.mxu1 %v2155_v8 }
 0x181   :  { %1676 = vmatpush3.bf16.msra.mxu1 %v1858_v20 }
 0x182   :  { %1677 = vmatprep.subr.bf16.mxu1 %v2155_v8 }
 0x183   :  { %v1910_v7 = vpop.eup %1909 }
 0x184   :  { %v1912_v9 = vpop.eup %1911  ;;  %v329_v10 = vxor.u32 2147483648, %v1910_v7 }
 0x185   :  { %v326_v11 = vxor.u32 2147483648, %v1912_v9  ;;  %1678 = vmatpush3.bf16.msra.mxu1 %v1859_v21 }
 0x186   :  { %v330_v12 = vsel %vm328_vm10, %v329_v10, %v1912_v9  ;;  %1679 = vmatprep.subr.bf16.mxu1 %v2155_v8 }
 0x187   :  { %v327_v13 = vsel %vm325_vm11, %v1910_v7, %v326_v11 }
 0x188   :  { %v331_v44 = vsel %vm324_vm12, %v327_v13, %v330_v12 }
 0x189   :  { %v2470_v14 = vsel %vm321_vm13, nan, %v331_v44  ;;  %1680 = vmatpush3.bf16.msra.mxu1 %v1860_v22 }
 0x18a   :  { %v333_v15 = vpack.c.bf16 %v2470_v14, %v2470_v14  ;;  %1705 = vmatprep.subr.bf16.mxu1 %v2155_v8 }
 0x18c   :  { %1662 = vmatmul.mubr.bf16.vlgmr.msra.gmra.mrb[0].mxu0 %v333_v15 }
 0x18d   :  { %1701 = vmatprep.mubr.msk.bf16.mxu0 %vm2156_vm0, %v2155_v8  ;;  %1686 = vmatpush3.bf16.msra.mxu0 %v1861_v23 }
 0x18e   :  { %1687 = vmatprep.subr.bf16.mxu0 %v2155_v8 }
 0x191   :  { %1688 = vmatpush3.bf16.msra.mxu0 %v1862_v24 }
 0x192   :  { %1689 = vmatprep.subr.bf16.mxu0 %v2155_v8 }
 0x25f   :  { %v439_v26 = vpop.f32.mrb[0].mxu0 }
 0x260   :  { %v2489_v27 = vadd.f32 %v1493_v25, %v439_v26  ;;  %v1663_v28 = vpop.f32.mrb[1].mxu0 }
 0x261   :  { %v442_v29 = vpop.f32.mrb[2].mxu0 }
 0x262   :  { %v448_v30 = vand.u32 2139095040, %v2489_v27  ;;  %v1664_v31 = vpop.f32.mrb[3].mxu0  ;;  %v445_v35 = vand.u32 2147483647, %v2489_v27  ;;  %vm447_vm6 = vcmp.lt.s32.totalorder %v2489_v27, 0  ;;  %vm537_vm11 = vweird.f32 %v2489_v27 }
 0x264   :  { %v449_v32 = vshrl.u32 %v448_v30, 23  ;;  %v452_v38 = vand.u32 8388607, %v445_v35  ;;  %vm446_vm7 = vcmp.le.f32.partialorder %v445_v35, 0.7853982 }
 0x266   :  { %v1502_v33 = vadd.s32 4294967169, %v449_v32  ;;  %v453_v53 = vor.u32 8388608, %v452_v38 }
 0x268   :  { %v455_v34 = vadd.s32 1, %v1502_v33  ;;  %v493_v10 = vshll.u32 %v453_v53, 8 }
 0x26a   :  { %vm456_vm14 = vcmp.gt.s32.totalorder %v455_v34, 0 }
 0x26b   :  { %v457_v36 = vsel %vm456_vm14, %v455_v34, 0 }
 0x26c   :  { %v459_v37 = vand.u32 31, %v457_v36  ;;  %v458_v40 = vshrl.u32 %v457_v36, 5 }
 0x26e   :  { %v460_v39 = vsub.s32 32, %v459_v37  ;;  %v462_v41 = vshll.u32 %v2160_v62, %v459_v37  ;;  %v465_v43 = vshll.u32 %v2161_v0, %v459_v37  ;;  %v468_v47 = vshll.u32 %v2162_v3, %v459_v37 }
 0x26f   :  { %v471_v49 = vshll.u32 %v2157_v54, %v459_v37  ;;  %v474_v51 = vshll.u32 %v2158_v56, %v459_v37  ;;  %vm477_vm15 = vcmp.lt.s32.totalorder %v458_v40, 1  ;;  %vm480_vm1 = vcmp.lt.s32.totalorder %v458_v40, 4 }
 0x270   :  { %v463_v45 = vshrl.u32 %v2161_v0, %v460_v39  ;;  %v466_v46 = vshrl.u32 %v2162_v3, %v460_v39  ;;  %v469_v48 = vshrl.u32 %v2157_v54, %v460_v39  ;;  %v472_v50 = vshrl.u32 %v2158_v56, %v460_v39 }
 0x271   :  { %v475_v52 = vshrl.u32 %v2159_v60, %v460_v39  ;;  %v461_v4 = vshrl.u32 %v2160_v62, %v460_v39  ;;  %vm479_vm2 = vcmp.lt.s32.totalorder %v458_v40, 3  ;;  %vm478_vm3 = vcmp.lt.s32.totalorder %v458_v40, 2 }
 0x272   :  { %v464_v55 = vor.u32 %v463_v45, %v462_v41  ;;  %v467_v57 = vor.u32 %v466_v46, %v465_v43  ;;  %v470_v58 = vor.u32 %v469_v48, %v468_v47  ;;  %v473_v59 = vor.u32 %v472_v50, %v471_v49 }
 0x273   :  { %v476_v61 = vor.u32 %v475_v52, %v474_v51 }
 0x274   :  { %v482_v63 = vsel %vm480_vm1, %v470_v58, 2102212464  ;;  %v485_v1 = vsel %vm477_vm15, %v464_v55, %v467_v57  ;;  %v489_v2 = vsel %vm477_vm15, %v467_v57, %v470_v58  ;;  %v486_v5 = vsel %vm480_vm1, %v473_v59, 920167782 }
 0x275   :  { %v490_v6 = vsel %vm480_vm1, %v476_v61, 1326507024  ;;  %v487_v7 = vsel %vm479_vm2, %v470_v58, %v486_v5  ;;  %v481_v11 = vsel %vm477_vm15, %v461_v4, %v464_v55  ;;  %v483_v12 = vsel %vm479_vm2, %v467_v57, %v482_v63 }
 0x276   :  { %v491_v9 = vsel %vm479_vm2, %v473_v59, %v490_v6  ;;  %v488_v13 = vsel %vm478_vm3, %v485_v1, %v487_v7  ;;  %v484_v42 = vsel %vm478_vm3, %v481_v11, %v483_v12  ;;  %v1863_v7 = vld [vmem:[#allocation7 + $0x10] sm:$0xff]   ;;  %v1868_v11 = vld [vmem:[#allocation7 + $0x38] sm:$0xff]   ;;  %v1869_v12 = vld [vmem:[#allocation8] sm:$0xff]  }
 0x277   :  { %v492_v44 = vsel %vm478_vm3, %v489_v2, %v491_v9  ;;  %v2509_v17 = vmul.u32.u64.low %v493_v10, %v488_v13  ;;  %v2510_v18 = vmul.u32.u64.high %v493_v10, %v488_v13, %v2509_v17  ;;  %v500_v20 = vmul.u32 %v493_v10, %v484_v42  ;;  %1690 = vmatpush3.bf16.msra.mxu0 %v1863_v7  ;;  %v1864_v9 = vld [vmem:[#allocation7 + $0x18] sm:$0xff]   ;;  %v1870_v13 = vld [vmem:[#allocation8 + $0x8] sm:$0xff]  }
 0x278   :  { %v2506_v15 = vmul.u32.u64.low %v493_v10, %v492_v44  ;;  %v2507_v16 = vmul.u32.u64.high %v493_v10, %v492_v44, %v2506_v15  ;;  %1691 = vmatprep.subr.bf16.mxu0 %v2155_v8  ;;  %v1865_v10 = vld [vmem:[#allocation7 + $0x20] sm:$0xff]  }
 0x279   :  { %v503_v19 = vadd.s32 1, %v2510_v18  ;;  %v1506_v44 = vld [vmem:[%s2658_s12] ss:$0 sm:$0xff] }
 0x27a   :  { %vm502_vm4 = vc.u32 %v2507_v16, %v2509_v17  ;;  %v501_v33 = vadd.s32 %v2509_v17, %v2507_v16 }
 0x27b   :  { %v504_v21 = vsel %vm502_vm4, %v503_v19, %v2510_v18  ;;  %1692 = vmatpush3.bf16.msra.mxu0 %v1864_v9 }
 0x27c   :  { %v505_v22 = vadd.s32 %v504_v21, %v500_v20  ;;  %1693 = vmatprep.subr.bf16.mxu0 %v2155_v8 }
 0x27e   :  { %v506_v23 = vadd.s32 536870912, %v505_v22 }
 0x27f   :  { %1694 = vmatpush3.bf16.msra.mxu0 %v1865_v10 }
 0x280   :  { %v507_v24 = vshrl.u32 %v506_v23, 30  ;;  %1695 = vmatprep.subr.bf16.mxu0 %v2155_v8 }
 0x282   :  { %v508_v25 = vshll.u32 %v507_v24, 30  ;;  %v531_v48 = vsub.s32 4, %v507_v24 }
 0x284   :  { %v509_v26 = vsub.s32 %v505_v22, %v508_v25  ;;  %v532_v51 = vsel %vm447_vm6, %v531_v48, %v507_v24 }
 0x285   :  { %v534_v53 = vsel %vm446_vm7, 0, %v532_v51 }
 0x286   :  { %v511_v28 = vsub.s32 0, %v509_v26  ;;  %v538_v55 = vadd.s32 3, %v534_v53  ;;  %v1881_v53 = vld [vmem:[#allocation10 + $0x20] sm:$0xff]  }
 0x288   :  { %v1503_v29 = vmin.u32 %v511_v28, %v509_v26  ;;  %v539_v57 = vand.u32 3, %v538_v55  ;;  %v1872_v28 = vld [vmem:[#allocation8 + $0x18] sm:$0xff]   ;;  %v1882_v55 = vld [vmem:[#allocation10 + $0x28] sm:$0xff]  }
 0x28a   :  { %v513_v30 = vclz %v1503_v29  ;;  %vm544_vm8 = vcmp.eq.s32.totalorder %v539_v57, 2  ;;  %vm541_vm9 = vcmp.eq.s32.totalorder %v539_v57, 0  ;;  %vm540_vm10 = vcmp.lt.s32.totalorder %v539_v57, 2  ;;  %v1873_v29 = vld [vmem:[#allocation8 + $0x20] sm:$0xff]   ;;  %v1883_v57 = vld [vmem:[#allocation10 + $0x30] sm:$0xff]  }
 0x28c   :  { %v1504_v31 = vadd.s32 4294967294, %v513_v30  ;;  %v1874_v30 = vld [vmem:[#allocation8 + $0x28] sm:$0xff]  }
 0x28e   :  { %vm1505_vm5 = vcmp.lt.s32.totalorder %v1504_v31, 0 }
 0x28f   :  { %v516_v32 = vsel %vm1505_vm5, 0, %v1504_v31  ;;  %v1875_v31 = vld [vmem:[#allocation8 + $0x30] sm:$0xff]  }
 0x290   :  { %v517_v34 = vsub.s32 32, %v516_v32  ;;  %v521_v36 = vsub.s32 4294967266, %v516_v32  ;;  %v518_v37 = vshll.u32 %v509_v26, %v516_v32  ;;  %v1871_v26 = vld [vmem:[#allocation8 + $0x10] sm:$0xff]   ;;  %v1876_v32 = vld [vmem:[#allocation8 + $0x38] sm:$0xff]  }
 0x292   :  { %v519_v38 = vshrl.u32 %v501_v33, %v517_v34  ;;  %v522_v39 = vadd.s32 127, %v521_v36  ;;  %v1877_v33 = vld [vmem:[#allocation10] sm:$0xff]   ;;  %v1878_v34 = vld [vmem:[#allocation10 + $0x8] sm:$0xff]   ;;  %v1879_v36 = vld [vmem:[#allocation10 + $0x10] sm:$0xff]  }
 0x294   :  { %v520_v40 = vor.u32 %v519_v38, %v518_v37  ;;  %v523_v41 = vshll.u32 %v522_v39, 23  ;;  %v1515_v37 = vld [vmem:[%s2659_s13] ss:$0 sm:$0xff] }
 0x296   :  { %v524_v43 = vor.u32 4788187, %v523_v41  ;;  %v527_v46 = vcvt.s32.f32 %v520_v40 }
 0x298   :  { %v525_v45 = vand.u32 2147483647, %v524_v43 }
 0x29a   :  { %v528_v47 = vmul.f32 %v527_v46, %v525_v45 }
 0x29c   :  { %v529_v49 = vxor.u32 2147483648, %v528_v47 }
 0x29e   :  { %v530_v50 = vsel %vm447_vm6, %v529_v49, %v528_v47 }
 0x29f   :  { %v533_v52 = vsel %vm446_vm7, %v2489_v27, %v530_v50  ;;  %v1866_v27 = vld [vmem:[#allocation7 + $0x28] sm:$0xff]  }
 0x2a0   :  { %1913 = vcosq.f32 %v533_v52  ;;  %1696 = vmatpush3.bf16.msra.mxu0 %v1866_v27  ;;  %v1885_v27 = vld [vmem:[#allocation11] sm:$0xff]  }
 0x2a1   :  { %1915 = vsinq.f32 %v533_v52  ;;  %1697 = vmatprep.subr.bf16.mxu0 %v2155_v8  ;;  %v1880_v52 = vld [vmem:[#allocation10 + $0x18] sm:$0xff]  }
 0x2aa   :  { %v1914_v58 = vpop.eup %1913 }
 0x2ab   :  { %v1916_v59 = vpop.eup %1915  ;;  %v545_v61 = vxor.u32 2147483648, %v1914_v58 }
 0x2ac   :  { %v542_v63 = vxor.u32 2147483648, %v1916_v59 }
 0x2ad   :  { %v546_v1 = vsel %vm544_vm8, %v545_v61, %v1916_v59  ;;  %v1524_v59 = vld [vmem:[%s2660_s14] ss:$0 sm:$0xff] }
 0x2ae   :  { %v543_v2 = vsel %vm541_vm9, %v1914_v58, %v542_v63  ;;  %v1884_v58 = vld [vmem:[#allocation10 + $0x38] sm:$0xff]  }
 0x2af   :  { %v547_v35 = vsel %vm540_vm10, %v543_v2, %v546_v1 }
 0x2b0   :  { %v548_v4 = vsel %vm537_vm11, nan, %v547_v35 }
 0x2b1   :  { %v549_v5 = vadd.f32 %v548_v4, %v2470_v14  ;;  %v1867_v14 = vld [vmem:[#allocation7 + $0x30] sm:$0xff]  }
 0x2b2   :  { %1698 = vmatpush3.bf16.msra.mxu0 %v1867_v14  ;;  %v1886_v14 = vld [vmem:[#allocation11 + $0x8] sm:$0xff]  }
 0x2b3   :  { %v550_v6 = vpack.c.bf16 %v549_v5, %v549_v5  ;;  %1699 = vmatprep.subr.bf16.mxu0 %v2155_v8 }
 0x2b5   :  { %1682 = vmatmul.mubr.bf16.vlgmr.msra.gmra.mrb[0].mxu1 %v550_v6 }
 0x2b6   :  { %1721 = vmatprep.mubr.msk.bf16.mxu1 %vm2156_vm0, %v2155_v8  ;;  %1700 = vmatpush3.bf16.msra.mxu0 %v1868_v11  ;;  %v1887_v11 = vld [vmem:[#allocation11 + $0x10] sm:$0xff]  }
 0x2b7   :  { %1725 = vmatprep.subr.bf16.mxu0 %v2155_v8  ;;  %1706 = vmatpush3.bf16.msra.mxu1 %v1869_v12  ;;  %v1888_v12 = vld [vmem:[#allocation11 + $0x18] sm:$0xff]  }
 0x2b8   :  { %1707 = vmatprep.subr.bf16.mxu1 %v2155_v8 }
 0x2bb   :  { %1708 = vmatpush3.bf16.msra.mxu1 %v1870_v13  ;;  %v1889_v13 = vld [vmem:[#allocation11 + $0x20] sm:$0xff]  }
 0x2bc   :  { %1709 = vmatprep.subr.bf16.mxu1 %v2155_v8 }
 0x2bf   :  { %1710 = vmatpush3.bf16.msra.mxu1 %v1871_v26 }
 0x2c0   :  { %1711 = vmatprep.subr.bf16.mxu1 %v2155_v8 }
 0x2c3   :  { %1712 = vmatpush3.bf16.msra.mxu1 %v1872_v28 }
 0x2c4   :  { %1713 = vmatprep.subr.bf16.mxu1 %v2155_v8 }
 0x2c7   :  { %1714 = vmatpush3.bf16.msra.mxu1 %v1873_v29 }
 0x2c8   :  { %1715 = vmatprep.subr.bf16.mxu1 %v2155_v8 }
 0x2cb   :  { %1716 = vmatpush3.bf16.msra.mxu1 %v1874_v30 }
 0x2cc   :  { %1717 = vmatprep.subr.bf16.mxu1 %v2155_v8 }
 0x2cf   :  { %1718 = vmatpush3.bf16.msra.mxu1 %v1875_v31 }
 0x2d0   :  { %1719 = vmatprep.subr.bf16.mxu1 %v2155_v8 }
 0x2d3   :  { %1720 = vmatpush3.bf16.msra.mxu1 %v1876_v32 }
 0x2d4   :  { %1745 = vmatprep.subr.bf16.mxu1 %v2155_v8 }
 0x388   :  { %v656_v15 = vpop.f32.mrb[0].mxu1 }
 0x389   :  { %v657_v16 = vadd.f32 %v1506_v44, %v656_v15  ;;  %v1683_v17 = vpop.f32.mrb[1].mxu1  ;;  %v1890_v44 = vld [vmem:[#allocation11 + $0x28] sm:$0xff]   ;;  %v1891_v15 = vld [vmem:[#allocation11 + $0x30] sm:$0xff]  }
 0x38a   :  { %v659_v18 = vpop.f32.mrb[2].mxu1  ;;  %v1893_v17 = vld [vmem:[#allocation13] sm:$0xff]  }
 0x38b   :  { %v663_v42 = vmul.f32 0.70710677, %v657_v16  ;;  %v1684_v19 = vpop.f32.mrb[3].mxu1  ;;  %v662_v21 = vmul.f32 0.5, %v657_v16  ;;  %v1892_v16 = vld [vmem:[#allocation11 + $0x38] sm:$0xff]   ;;  %v1894_v18 = vld [vmem:[#allocation13 + $0x8] sm:$0xff]  }
 0x38d   :  { %1917 = verf.f32 %v663_v42  ;;  %v1533_v42 = vld [vmem:[%s2661_s15] ss:$0 sm:$0xff] }
 0x397   :  { %v1918_v20 = vpop.eup %1917 }
 0x398   :  { %v665_v22 = vadd.f32 1.0, %v1918_v20 }
 0x39a   :  { %v666_v23 = vmul.f32 %v665_v22, %v662_v21 }
 0x39c   :  { %v667_v24 = vadd.f32 %v666_v23, %v549_v5 }
 0x39e   :  { %v668_v25 = vpack.c.bf16 %v667_v24, %v667_v24 }
 0x3a0   :  { %1702 = vmatmul.mubr.bf16.vlgmr.msra.gmra.mrb[4].mxu0 %v668_v25 }
 0x3a1   :  { %1741 = vmatprep.mubr.msk.bf16.mxu0 %vm2156_vm0, %v2155_v8  ;;  %1726 = vmatpush3.bf16.msra.mxu0 %v1877_v33 }
 0x3a2   :  { %1727 = vmatprep.subr.bf16.mxu0 %v2155_v8 }
 0x3a5   :  { %1728 = vmatpush3.bf16.msra.mxu0 %v1878_v34 }
 0x3a6   :  { %1729 = vmatprep.subr.bf16.mxu0 %v2155_v8 }
 0x3a9   :  { %1730 = vmatpush3.bf16.msra.mxu0 %v1879_v36 }
 0x3aa   :  { %1731 = vmatprep.subr.bf16.mxu0 %v2155_v8 }
 0x3ad   :  { %1732 = vmatpush3.bf16.msra.mxu0 %v1880_v52 }
 0x3ae   :  { %1733 = vmatprep.subr.bf16.mxu0 %v2155_v8 }
 0x3b1   :  { %1734 = vmatpush3.bf16.msra.mxu0 %v1881_v53 }
 0x3b2   :  { %1735 = vmatprep.subr.bf16.mxu0 %v2155_v8 }
 0x3b5   :  { %1736 = vmatpush3.bf16.msra.mxu0 %v1882_v55 }
 0x3b6   :  { %1737 = vmatprep.subr.bf16.mxu0 %v2155_v8 }
 0x3b9   :  { %1738 = vmatpush3.bf16.msra.mxu0 %v1883_v57 }
 0x3ba   :  { %1739 = vmatprep.subr.bf16.mxu0 %v2155_v8 }
 0x3bd   :  { %1740 = vmatpush3.bf16.msra.mxu0 %v1884_v58 }
 0x3be   :  { %1765 = vmatprep.subr.bf16.mxu0 %v2155_v8 }
 0x473   :  { %v774_v38 = vpop.f32.mrb[4].mxu0 }
 0x474   :  { %v775_v39 = vadd.f32 %v1515_v37, %v774_v38  ;;  %v1703_v40 = vpop.f32.mrb[5].mxu0 }
 0x475   :  { %v777_v41 = vpop.f32.mrb[6].mxu0 }
 0x476   :  { %v781_v43 = vmul.f32 0.70710677, %v775_v39  ;;  %v1704_v45 = vpop.f32.mrb[7].mxu0  ;;  %v780_v47 = vmul.f32 0.5, %v775_v39 }
 0x478   :  { %1919 = verf.f32 %v781_v43 }
 0x482   :  { %v1920_v46 = vpop.eup %1919 }
 0x483   :  { %v783_v48 = vadd.f32 1.0, %v1920_v46 }
 0x485   :  { %v784_v49 = vmul.f32 %v783_v48, %v780_v47 }
 0x487   :  { %v785_v50 = vadd.f32 %v784_v49, %v667_v24 }
 0x489   :  { %v786_v51 = vpack.c.bf16 %v785_v50, %v785_v50 }
 0x48b   :  { %1722 = vmatmul.mubr.bf16.vlgmr.msra.gmra.mrb[4].mxu1 %v786_v51 }
 0x48c   :  { %1761 = vmatprep.mubr.msk.bf16.mxu1 %vm2156_vm0, %v2155_v8  ;;  %1746 = vmatpush3.bf16.msra.mxu1 %v1885_v27 }
 0x48d   :  { %1747 = vmatprep.subr.bf16.mxu1 %v2155_v8 }
 0x490   :  { %1748 = vmatpush3.bf16.msra.mxu1 %v1886_v14 }
 0x491   :  { %1749 = vmatprep.subr.bf16.mxu1 %v2155_v8 }
 0x494   :  { %1750 = vmatpush3.bf16.msra.mxu1 %v1887_v11 }
 0x495   :  { %1751 = vmatprep.subr.bf16.mxu1 %v2155_v8 }
 0x498   :  { %1752 = vmatpush3.bf16.msra.mxu1 %v1888_v12 }
 0x499   :  { %1753 = vmatprep.subr.bf16.mxu1 %v2155_v8 }
 0x49c   :  { %1754 = vmatpush3.bf16.msra.mxu1 %v1889_v13 }
 0x49d   :  { %1755 = vmatprep.subr.bf16.mxu1 %v2155_v8 }
 0x4a0   :  { %1756 = vmatpush3.bf16.msra.mxu1 %v1890_v44 }
 0x4a1   :  { %1757 = vmatprep.subr.bf16.mxu1 %v2155_v8 }
 0x4a4   :  { %1758 = vmatpush3.bf16.msra.mxu1 %v1891_v15 }
 0x4a5   :  { %1759 = vmatprep.subr.bf16.mxu1 %v2155_v8 }
 0x4a8   :  { %1760 = vmatpush3.bf16.msra.mxu1 %v1892_v16 }
 0x4a9   :  { %1785 = vmatprep.subr.bf16.mxu1 %v2155_v8 }
 0x55e   :  { %v892_v61 = vpop.f32.mrb[4].mxu1 }
 0x55f   :  { %v893_v63 = vadd.f32 %v1524_v59, %v892_v61  ;;  %v1723_v1 = vpop.f32.mrb[5].mxu1 }
 0x560   :  { %v895_v2 = vpop.f32.mrb[6].mxu1 }
 0x561   :  { %v899_v35 = vmul.f32 0.70710677, %v893_v63  ;;  %v1724_v4 = vpop.f32.mrb[7].mxu1  ;;  %v898_v6 = vmul.f32 0.5, %v893_v63 }
 0x563   :  { %1921 = verf.f32 %v899_v35 }
 0x56d   :  { %v1922_v5 = vpop.eup %1921 }
 0x56e   :  { %v901_v7 = vadd.f32 1.0, %v1922_v5 }
 0x570   :  { %v2559_v9 = vmul.f32 %v901_v7, %v898_v6 }
 0x572   :  { %v903_v10 = vpack.c.bf16 %v2559_v9, %v2559_v9 }
 0x574   :  { %1742 = vmatmul.mubr.bf16.vlgmr.msra.gmra.mrb[8].mxu0 %v903_v10 }
 0x575   :  { %1781 = vmatprep.mubr.msk.bf16.mxu0 %vm2156_vm0, %v2155_v8  ;;  %1766 = vmatpush3.bf16.msra.mxu0 %v1893_v17 }
 0x576   :  { %1767 = vmatprep.subr.bf16.mxu0 %v2155_v8 }
 0x579   :  { %1768 = vmatpush3.bf16.msra.mxu0 %v1894_v18 }
 0x57a   :  { %1769 = vmatprep.subr.bf16.mxu0 %v2155_v8 }
 0x647   :  { %v1009_v19 = vpop.f32.mrb[8].mxu0 }
 0x648   :  { %v2578_v20 = vadd.f32 %v1533_v42, %v1009_v19  ;;  %v1743_v21 = vpop.f32.mrb[9].mxu0 }
 0x649   :  { %v1012_v22 = vpop.f32.mrb[10].mxu0 }
 0x64a   :  { %v1018_v23 = vand.u32 2139095040, %v2578_v20  ;;  %v1744_v24 = vpop.f32.mrb[11].mxu0  ;;  %v1015_v29 = vand.u32 2147483647, %v2578_v20  ;;  %vm1017_vm4 = vcmp.lt.s32.totalorder %v2578_v20, 0  ;;  %vm1107_vm9 = vweird.f32 %v2578_v20 }
 0x64c   :  { %v1019_v25 = vshrl.u32 %v1018_v23, 23  ;;  %v1022_v32 = vand.u32 8388607, %v1015_v29  ;;  %vm1016_vm5 = vcmp.le.f32.partialorder %v1015_v29, 0.7853982 }
 0x64e   :  { %v1542_v26 = vadd.s32 4294967169, %v1019_v25  ;;  %v1023_v48 = vor.u32 8388608, %v1022_v32 }
 0x650   :  { %v1025_v28 = vadd.s32 1, %v1542_v26 }
 0x652   :  { %vm1026_vm12 = vcmp.gt.s32.totalorder %v1025_v28, 0 }
 0x653   :  { %v1027_v30 = vsel %vm1026_vm12, %v1025_v28, 0 }
 0x654   :  { %v1029_v31 = vand.u32 31, %v1027_v30  ;;  %v1028_v34 = vshrl.u32 %v1027_v30, 5 }
 0x656   :  { %v1030_v33 = vsub.s32 32, %v1029_v31  ;;  %v1032_v36 = vshll.u32 %v2160_v62, %v1029_v31  ;;  %v1035_v37 = vshll.u32 %v2161_v0, %v1029_v31  ;;  %v1038_v40 = vshll.u32 %v2162_v3, %v1029_v31 }
 0x657   :  { %v1041_v43 = vshll.u32 %v2157_v54, %v1029_v31  ;;  %v1044_v46 = vshll.u32 %v2158_v56, %v1029_v31  ;;  %vm1047_vm13 = vcmp.lt.s32.totalorder %v1028_v34, 1  ;;  %vm1050_vm14 = vcmp.lt.s32.totalorder %v1028_v34, 4 }
 0x658   :  { %v1033_v38 = vshrl.u32 %v2161_v0, %v1030_v33  ;;  %v1036_v39 = vshrl.u32 %v2162_v3, %v1030_v33  ;;  %v1039_v41 = vshrl.u32 %v2157_v54, %v1030_v33  ;;  %v1042_v45 = vshrl.u32 %v2158_v56, %v1030_v33 }
 0x659   :  { %v1045_v47 = vshrl.u32 %v2159_v60, %v1030_v33  ;;  %v1031_v57 = vshrl.u32 %v2160_v62, %v1030_v33  ;;  %vm1049_vm15 = vcmp.lt.s32.totalorder %v1028_v34, 3  ;;  %vm1048_vm1 = vcmp.lt.s32.totalorder %v1028_v34, 2 }
 0x65a   :  { %v1034_v49 = vor.u32 %v1033_v38, %v1032_v36  ;;  %v1037_v50 = vor.u32 %v1036_v39, %v1035_v37  ;;  %v1040_v51 = vor.u32 %v1039_v41, %v1038_v40  ;;  %v1043_v52 = vor.u32 %v1042_v45, %v1041_v43 }
 0x65b   :  { %v1046_v0 = vor.u32 %v1045_v47, %v1044_v46  ;;  %v1063_v60 = vshll.u32 %v1023_v48, 8 }
 0x65c   :  { %v1052_v53 = vsel %vm1050_vm14, %v1040_v51, 2102212464  ;;  %v1055_v3 = vsel %vm1047_vm13, %v1034_v49, %v1037_v50  ;;  %v1059_v55 = vsel %vm1047_vm13, %v1037_v50, %v1040_v51  ;;  %v1056_v54 = vsel %vm1050_vm14, %v1043_v52, 920167782 }
 0x65d   :  { %v1060_v58 = vsel %vm1050_vm14, %v1046_v0, 1326507024  ;;  %v1057_v56 = vsel %vm1049_vm15, %v1040_v51, %v1056_v54  ;;  %v1051_v61 = vsel %vm1047_vm13, %v1031_v57, %v1034_v49  ;;  %v1053_v63 = vsel %vm1049_vm15, %v1037_v50, %v1052_v53  ;;  %v1895_v53 = vld [vmem:[#allocation13 + $0x10] sm:$0xff]   ;;  %v1900_v57 = vld [vmem:[#allocation13 + $0x38] sm:$0xff]   ;;  %v1901_v54 = vld [vmem:[#allocation14] sm:$0xff]  }
 0x65e   :  { %v1061_v59 = vsel %vm1049_vm15, %v1043_v52, %v1060_v58  ;;  %v1058_v1 = vsel %vm1048_vm1, %v1055_v3, %v1057_v56  ;;  %v1054_v7 = vsel %vm1048_vm1, %v1051_v61, %v1053_v63  ;;  %1770 = vmatpush3.bf16.msra.mxu0 %v1895_v53  ;;  %v1896_v3 = vld [vmem:[#allocation13 + $0x18] sm:$0xff]   ;;  %v1902_v58 = vld [vmem:[#allocation14 + $0x8] sm:$0xff]   ;;  %v1546_v56 = vld [vmem:[%s2662_s16] ss:$0 sm:$0xff] }
 0x65f   :  { %v1062_v2 = vsel %vm1048_vm1, %v1059_v55, %v1061_v59  ;;  %v2598_v5 = vmul.u32.u64.low %v1063_v60, %v1058_v1  ;;  %v2599_v6 = vmul.u32.u64.high %v1063_v60, %v1058_v1, %v2598_v5  ;;  %v1070_v10 = vmul.u32 %v1063_v60, %v1054_v7  ;;  %1771 = vmatprep.subr.bf16.mxu0 %v2155_v8  ;;  %v1897_v55 = vld [vmem:[#allocation13 + $0x20] sm:$0xff]  }
 0x660   :  { %v2595_v35 = vmul.u32.u64.low %v1063_v60, %v1062_v2  ;;  %v2596_v4 = vmul.u32.u64.high %v1063_v60, %v1062_v2, %v2595_v35 }
 0x661   :  { %v1073_v62 = vadd.s32 1, %v2599_v6 }
 0x662   :  { %vm1072_vm2 = vc.u32 %v2596_v4, %v2598_v5  ;;  %v1071_v19 = vadd.s32 %v2598_v5, %v2596_v4  ;;  %1772 = vmatpush3.bf16.msra.mxu0 %v1896_v3 }
 0x663   :  { %v1074_v27 = vsel %vm1072_vm2, %v1073_v62, %v2599_v6  ;;  %1773 = vmatprep.subr.bf16.mxu0 %v2155_v8 }
 0x664   :  { %v1075_v14 = vadd.s32 %v1074_v27, %v1070_v10  ;;  %v1903_v10 = vld [vmem:[#allocation14 + $0x10] sm:$0xff]   ;;  %v1904_v27 = vld [vmem:[#allocation14 + $0x18] sm:$0xff]  }
 0x666   :  { %v1076_v11 = vadd.s32 536870912, %v1075_v14  ;;  %1774 = vmatpush3.bf16.msra.mxu0 %v1897_v55 }
 0x667   :  { %1775 = vmatprep.subr.bf16.mxu0 %v2155_v8 }
 0x668   :  { %v1077_v12 = vshrl.u32 %v1076_v11, 30  ;;  %v1906_v11 = vld [vmem:[#allocation14 + $0x28] sm:$0xff]  }
 0x66a   :  { %v1078_v13 = vshll.u32 %v1077_v12, 30  ;;  %v1101_v34 = vsub.s32 4, %v1077_v12 }
 0x66c   :  { %v1079_v44 = vsub.s32 %v1075_v14, %v1078_v13  ;;  %v1102_v38 = vsel %vm1017_vm4, %v1101_v34, %v1077_v12  ;;  %v1905_v14 = vld [vmem:[#allocation14 + $0x20] sm:$0xff]   ;;  %v1907_v12 = vld [vmem:[#allocation14 + $0x30] sm:$0xff]   ;;  %v1908_v13 = vld [vmem:[#allocation14 + $0x38] sm:$0xff]  }
 0x66d   :  { %v1104_v40 = vsel %vm1016_vm5, 0, %v1102_v38 }
 0x66e   :  { %v1081_v15 = vsub.s32 0, %v1079_v44  ;;  %v1108_v41 = vadd.s32 3, %v1104_v40 }
 0x670   :  { %v1543_v16 = vmin.u32 %v1081_v15, %v1079_v44  ;;  %v1109_v43 = vand.u32 3, %v1108_v41 }
 0x672   :  { %v1083_v17 = vclz %v1543_v16  ;;  %vm1114_vm6 = vcmp.eq.s32.totalorder %v1109_v43, 2  ;;  %vm1111_vm7 = vcmp.eq.s32.totalorder %v1109_v43, 0  ;;  %vm1110_vm8 = vcmp.lt.s32.totalorder %v1109_v43, 2 }
 0x674   :  { %v1544_v18 = vadd.s32 4294967294, %v1083_v17 }
 0x676   :  { %vm1545_vm3 = vcmp.lt.s32.totalorder %v1544_v18, 0 }
 0x677   :  { %v1086_v42 = vsel %vm1545_vm3, 0, %v1544_v18 }
 0x678   :  { %v1087_v21 = vsub.s32 32, %v1086_v42  ;;  %v1091_v22 = vsub.s32 4294967266, %v1086_v42  ;;  %v1088_v23 = vshll.u32 %v1079_v44, %v1086_v42  ;;  %v1555_v44 = vld [vmem:[%s2663_s17] ss:$0 sm:$0xff]  ;;  %s1475_s17 = sshll.u32 %s2163_s26, 4  ;;  %s1476_s17 = int_to_ptr.vmem [resolvable:$true] %s1475_s17 }
 0x679   :  { %s2107_s8 = scalar_lea.vmem %s1476_s17, 128  ;;  %p2112_p9 = scmp.lt.s32.totalorder %s1476_s17, %s1476_s17 }
 0x67a   :  { %v1089_v24 = vshrl.u32 %v1071_v19, %v1087_v21  ;;  %v1092_v25 = vadd.s32 127, %v1091_v22  ;;  %p2108_p8 = scmp.ne.s32.totalorder %s1476_s17, %s2107_s8  ;;  %p2113_p10 = scmp.lt.s32.totalorder %s2107_s8, %s2107_s8 }
 0x67c   :  { %v1090_v26 = vor.u32 %v1089_v24, %v1088_v23  ;;  %v1093_v28 = vshll.u32 %v1092_v25, 23  ;;  %p2114_p11 = por %p2113_p10, %p2112_p9 }
 0x67e   :  { %v1094_v30 = vor.u32 4788187, %v1093_v28  ;;  %v1097_v32 = vcvt.s32.f32 %v1090_v26  ;;  %p2115_p12 = pnand %p2114_p11, %p2108_p8 }
 0x680   :  { %v1095_v31 = vand.u32 2147483647, %v1094_v30 }
 0x682   :  { %v1098_v33 = vmul.f32 %v1097_v32, %v1095_v31 }
 0x684   :  { %v1099_v36 = vxor.u32 2147483648, %v1098_v33 }
 0x686   :  { %v1100_v37 = vsel %vm1017_vm4, %v1099_v36, %v1098_v33 }
 0x687   :  { %v1103_v39 = vsel %vm1016_vm5, %v2578_v20, %v1100_v37  ;;  %v1898_v20 = vld [vmem:[#allocation13 + $0x28] sm:$0xff]  }
 0x688   :  { %1923 = vcosq.f32 %v1103_v39  ;;  %1776 = vmatpush3.bf16.msra.mxu0 %v1898_v20 }
 0x689   :  { %1925 = vsinq.f32 %v1103_v39  ;;  %1777 = vmatprep.subr.bf16.mxu0 %v2155_v8 }
 0x692   :  { %v1924_v45 = vpop.eup %1923 }
 0x693   :  { %v1926_v46 = vpop.eup %1925  ;;  %v1115_v47 = vxor.u32 2147483648, %v1924_v45 }
 0x694   :  { %v1112_v48 = vxor.u32 2147483648, %v1926_v46 }
 0x695   :  { %v1116_v49 = vsel %vm1114_vm6, %v1115_v47, %v1926_v46 }
 0x696   :  { %v1113_v50 = vsel %vm1111_vm7, %v1924_v45, %v1112_v48 }
 0x697   :  { %v1117_v29 = vsel %vm1110_vm8, %v1113_v50, %v1116_v49 }
 0x698   :  { %v1118_v51 = vsel %vm1107_vm9, nan, %v1117_v29 }
 0x699   :  { %v1119_v52 = vadd.f32 %v1118_v51, %v2559_v9  ;;  %v1899_v9 = vld [vmem:[#allocation13 + $0x30] sm:$0xff]  }
 0x69a   :  { %1778 = vmatpush3.bf16.msra.mxu0 %v1899_v9 }
 0x69b   :  { %v1120_v0 = vpack.c.bf16 %v1119_v52, %v1119_v52  ;;  %1779 = vmatprep.subr.bf16.mxu0 %v2155_v8 }
 0x69d   :  { %1762 = vmatmul.mubr.bf16.vlgmr.msra.gmra.mrb[8].mxu1 %v1120_v0 }
 0x69e   :  { %1801 = vmatprep.mubr.msk.bf16.mxu1 %vm2156_vm0, %v2155_v8  ;;  %1780 = vmatpush3.bf16.msra.mxu0 %v1900_v57 }
 0x69f   :  { %1786 = vmatpush3.bf16.msra.mxu1 %v1901_v54 }
 0x6a0   :  { %1787 = vmatprep.subr.bf16.mxu1 %v2155_v8 }
 0x6a3   :  { %1788 = vmatpush3.bf16.msra.mxu1 %v1902_v58 }
 0x6a4   :  { %1789 = vmatprep.subr.bf16.mxu1 %v2155_v8 }
 0x6a7   :  { %1790 = vmatpush3.bf16.msra.mxu1 %v1903_v10 }
 0x6a8   :  { %1791 = vmatprep.subr.bf16.mxu1 %v2155_v8 }
 0x6ab   :  { %1792 = vmatpush3.bf16.msra.mxu1 %v1904_v27 }
 0x6ac   :  { %1793 = vmatprep.subr.bf16.mxu1 %v2155_v8 }
 0x6af   :  { %1794 = vmatpush3.bf16.msra.mxu1 %v1905_v14 }
 0x6b0   :  { %1795 = vmatprep.subr.bf16.mxu1 %v2155_v8 }
 0x6b3   :  { %1796 = vmatpush3.bf16.msra.mxu1 %v1906_v11 }
 0x6b4   :  { %1797 = vmatprep.subr.bf16.mxu1 %v2155_v8 }
 0x6b7   :  { %1798 = vmatpush3.bf16.msra.mxu1 %v1907_v12 }
 0x6b8   :  { %1799 = vmatprep.subr.bf16.mxu1 %v2155_v8  ;;  %v1564_v8 = vld [vmem:[%s2664_s18] ss:$0 sm:$0xff] }
 0x6bb   :  { %1800 = vmatpush3.bf16.msra.mxu1 %v1908_v13 }
 0x770   :  { %v1226_v59 = vpop.f32.mrb[8].mxu1 }
 0x771   :  { %v1227_v60 = vadd.f32 %v1546_v56, %v1226_v59  ;;  %v1763_v61 = vpop.f32.mrb[9].mxu1 }
 0x772   :  { %v1229_v63 = vpop.f32.mrb[10].mxu1 }
 0x773   :  { %v1233_v1 = vmul.f32 0.70710677, %v1227_v60  ;;  %v1764_v2 = vpop.f32.mrb[11].mxu1  ;;  %v1232_v4 = vmul.f32 0.5, %v1227_v60 }
 0x775   :  { %1927 = verf.f32 %v1233_v1 }
 0x77f   :  { %v1928_v35 = vpop.eup %1927 }
 0x780   :  { %v1235_v5 = vadd.f32 1.0, %v1928_v35 }
 0x782   :  { %v1236_v6 = vmul.f32 %v1235_v5, %v1232_v4 }
 0x784   :  { %v1237_v7 = vadd.f32 %v1236_v6, %v1119_v52 }
 0x786   :  { %v1238_v62 = vpack.c.bf16 %v1237_v7, %v1237_v7 }
 0x788   :  { %1782 = vmatmul.mubr.bf16.vlgmr.msra.gmra.mrb[12].mxu0 %v1238_v62 }
 0x85b   :  { %v1344_v15 = vpop.f32.mrb[12].mxu0 }
 0x85c   :  { %v1345_v16 = vadd.f32 %v1555_v44, %v1344_v15  ;;  %v1783_v17 = vpop.f32.mrb[13].mxu0 }
 0x85d   :  { %v1347_v18 = vpop.f32.mrb[14].mxu0 }
 0x85e   :  { %v1351_v42 = vmul.f32 0.70710677, %v1345_v16  ;;  %v1784_v19 = vpop.f32.mrb[15].mxu0  ;;  %v1350_v22 = vmul.f32 0.5, %v1345_v16 }
 0x860   :  { %1929 = verf.f32 %v1351_v42 }
 0x86a   :  { %v1930_v21 = vpop.eup %1929 }
 0x86b   :  { %v1353_v23 = vadd.f32 1.0, %v1930_v21 }
 0x86d   :  { %v1354_v24 = vmul.f32 %v1353_v23, %v1350_v22 }
 0x86f   :  { %v1355_v25 = vadd.f32 %v1354_v24, %v1237_v7 }
 0x871   :  { %v1356_v26 = vpack.c.bf16 %v1355_v25, %v1355_v25 }
 0x873   :  { %1802 = vmatmul.mubr.bf16.vlgmr.msra.gmra.mrb[12].mxu1 %v1356_v26 }
 0x946   :  { %v1462_v28 = vpop.f32.mrb[12].mxu1 }
 0x947   :  { %v1463_v30 = vadd.f32 %v1564_v8, %v1462_v28  ;;  %v1803_v31 = vpop.f32.mrb[13].mxu1 }
 0x948   :  { %v1465_v32 = vpop.f32.mrb[14].mxu1 }
 0x949   :  { %1468 = vst [vmem:[#allocation16] sm:$0xff] %v1463_v30  ;;  %v1804_v33 = vpop.f32.mrb[15].mxu1 }
 0x94a   :  { %2118 = shalt.err (!%p2115_p12)
}
 0x94b   :  { %s2679_s20 = sld [smem:[#allocation27_spill]] }
 0x951   :  { %s2119_s18 = scalar_lea.hbm %s2679_s20, 128 }
 0x952   :  { %p2120_p13 = scmp.ne.s32.totalorder %s2679_s20, %s2119_s18  ;;  %p2123_p0 = scmp.lt.u32.totalorder %s2119_s18, %s2679_s20 }
 0x954   :  { %p2125_p1 = pnand %p2123_p0, %p2120_p13 }
 0x956   :  { %2128 = shalt.err (!%p2125_p1)
}
 0x957   :  { %1478 = dma.vmem_to_hbm [thread:$0]  %s1476_s17, 128, %s2679_s20, [#allocation4]  }
 0x958   :  { %2139 = dma.done.wait [#allocation4], 128  }
 0x959   :  { %2140 = vsyncadd [#allocation4], 4294967168 }
 0x95a   :  { %1482 = vsyncpa [#allocation3], 1 }
 0x95b   :  { %1483 = vsyncpa [#allocation6], 1 }
 0x95c   :  { %1484 = vsyncpa [#allocation9], 1 }
 0x95d   :  { %1485 = vsyncpa [#allocation12], 1 }
 0x95e   :  { %1486 = vsyncpa [#allocation15], 1 }
 0x95f   :  { %1487 = vsyncpa [#allocation4], 1 }

</bundles_post_ra>
